<compile_context>
chip_gen: v6e
topology: v6e:2x2x1
jax: 0.10.0
libtpu: 0.0.40
codegen_flags: <defaults>
</compile_context>

<pallas_src>
import functools
import math

import jax
import jax.numpy as jnp
from jax.experimental import pallas as pl
from jax.experimental.pallas import tpu as pltpu


# <= ~56 MiB keeps headroom under v7x's 64 MiB physical VMEM; working set is ~6-12 MB.
VMEM_LIMIT = 48 * 1024 * 1024


def _row_tile(n, target=512):
    """Largest multiple-of-8 tile <= target that divides n (falls back to n)."""
    if n <= target:
        return n
    t = (target // 8) * 8
    while t >= 8:
        if n % t == 0:
            return t
        t -= 8
    return n


def _batch_tile(bs, p_num, target_rows=128):
    """Largest divisor of bs such that bt*p_num <= target_rows; keep >=2 grid
    steps when bs >= 2 so both v7x TensorCores are occupied."""
    cap = max(1, target_rows // p_num)
    if bs >= 2:
        cap = max(1, min(cap, bs // 2))
    bt = 1
    for d in range(1, cap + 1):
        if bs % d == 0:
            bt = d
    return bt


# -----------------------------------------------------------------------------
# Pallas kernels (fused MLP stacks, bf16 MXU inputs / f32 accumulation & VPU math)
# -----------------------------------------------------------------------------
def _pcl_encoder_kernel(prior_ref, b1_ref, w1_ref, w2_ref, b2_ref,
                        local_ref, pool_ref):
    # grid = (bs, prior_num // tm); axis 1 is a max-pool accumulator axis.
    @pl.when(pl.program_id(1) == 0)
    def _():
        pool_ref[...] = jnp.zeros(pool_ref.shape, dtype=pool_ref.dtype)

    x = prior_ref[0]                                           # (tm, 3) f32
    w1 = w1_ref[...].astype(jnp.float32)                       # (3, h_pcl)
    # K=3 contraction on the VPU (broadcast FMAs) instead of an MXU round-trip.
    h = (x[:, 0:1] * w1[0:1, :] + x[:, 1:2] * w1[1:2, :]
         + x[:, 2:3] * w1[2:3, :] + b1_ref[0])
    h = jnp.maximum(h, 0.0).astype(jnp.bfloat16)
    lf = jnp.dot(h, w2_ref[...], preferred_element_type=jnp.float32) + b2_ref[...]
    lf = jnp.maximum(lf, 0.0)                                  # (tm, c_lprior) f32
    local_ref[0] = lf.astype(local_ref.dtype)                  # bf16 to HBM
    pool_ref[0] = jnp.maximum(pool_ref[0], jnp.max(lf, axis=0, keepdims=True))


def _deform_mlp_kernel(oid_ref, plocal_ref, vb_ref, w1_ref, w2_ref,
                       b2_ref, w3_ref, b3_ref, out_ref, *, rep, p_num):
    # oid_ref only drives the w3/b3 index_maps (per-category head selection).
    del oid_ref
    x = plocal_ref[0]                                          # (tm, c_lprior) bf16
    h1 = jnp.dot(x, w1_ref[...], preferred_element_type=jnp.float32)
    tm, hid1 = h1.shape
    # Per-batch (prior_global bias + tiled view-feature + b1) block, added via a
    # free reshape+broadcast (matches torch .repeat(1, prior_num//8, 1) tiling).
    h1 = (h1.reshape(rep, p_num, hid1) + vb_ref[0][None]).reshape(tm, hid1)
    h1 = jnp.maximum(h1, 0.0).astype(jnp.bfloat16)
    h2 = jnp.dot(h1, w2_ref[...], preferred_element_type=jnp.float32) + b2_ref[...]
    h2 = jnp.maximum(h2, 0.0).astype(jnp.bfloat16)
    out_ref[0] = jnp.dot(h2, w3_ref[0], preferred_element_type=jnp.float32) + b3_ref[0]


def _assign_softmax_bmm_kernel(view_ref, gb_ref, w1_ref, w2_ref, b2_ref,
                               w3_ref, b3_ref, inst_ref, assign_ref, nocs_ref):
    bt, p_num, c_view = view_ref.shape
    hid1 = w1_ref.shape[1]
    hid2 = w2_ref.shape[1]
    # Batch-packed: all Bt*p_num rows go through the big a1/a2 matmuls at once.
    x = view_ref[...].reshape(bt * p_num, c_view).astype(jnp.bfloat16)
    h1 = jnp.dot(x, w1_ref[...], preferred_element_type=jnp.float32)
    h1 = h1.reshape(bt, p_num, hid1) + gb_ref[...]             # per-batch bias
    h1 = jnp.maximum(h1, 0.0).astype(jnp.bfloat16)
    h2 = jnp.dot(h1.reshape(bt * p_num, hid1), w2_ref[...],
                 preferred_element_type=jnp.float32) + b2_ref[...]
    h2 = jnp.maximum(h2, 0.0).astype(jnp.bfloat16).reshape(bt, p_num, hid2)
    # Per-category head differs per batch item -> small batched matmul.
    a = jnp.einsum("bph,bhk->bpk", h2, w3_ref[...],
                   preferred_element_type=jnp.float32) + b3_ref[...]
    assign_ref[...] = a
    # Fused get_nocs_from_deform: softmax over prior points, then BMM (all f32).
    a = a - jnp.max(a, axis=-1, keepdims=True)
    e = jnp.exp(a)
    p = e / jnp.sum(e, axis=-1, keepdims=True)                 # exact reciprocal
    nocs_ref[...] = jnp.einsum("bpk,bkd->bpd", p, inst_ref[...],
                               preferred_element_type=jnp.float32)


def _face_recon_kernel(x_ref, bias_ref, w1_ref, w2_ref, b2_ref, o_ref):
    bt, p_num, c_view = x_ref.shape
    hid_f = w1_ref.shape[1]
    x = x_ref[...].reshape(bt * p_num, c_view).astype(jnp.bfloat16)
    h = jnp.dot(x, w1_ref[...], preferred_element_type=jnp.float32)
    h = h + bias_ref[...].reshape(bt * p_num, hid_f)           # small-K terms + b1
    h = jnp.maximum(h, 0.0).astype(jnp.bfloat16)
    o = jnp.dot(h, w2_ref[...], preferred_element_type=jnp.float32) + b2_ref[...]
    o_ref[...] = o.reshape(bt, p_num, o.shape[-1])             # lane-dense (128) store


# -----------------------------------------------------------------------------
# Parameter initialization (deterministic, synthetic; weights bf16, biases f32)
# -----------------------------------------------------------------------------
def init_params(key, *, n_cat, prior_num, c_view, c_gprior, c_lprior,
                h_pcl, hid1, hid2, hid_f):
    keys = iter(jax.random.split(key, 40))

    def w(shape, fan_in):
        s = 1.0 / math.sqrt(fan_in)
        return jax.random.uniform(next(keys), shape, jnp.float32, -s, s).astype(jnp.bfloat16)

    def b(shape, fan_in):
        s = 1.0 / math.sqrt(fan_in)
        return jax.random.uniform(next(keys), shape, jnp.float32, -s, s)

    p = {}
    # TODO(synk): PCL_Encoder architecture not given in the reference; PointNet-style stand-in.
    k1 = 3 + n_cat
    p["pcl_w1_p"] = w((3, h_pcl), k1)          # xyz columns of the first conv
    p["pcl_w1_c"] = w((n_cat, h_pcl), k1)      # one-hot(obj_id) columns -> per-batch bias
    p["pcl_b1"] = b((h_pcl,), k1)
    p["pcl_w2"] = w((h_pcl, c_lprior), h_pcl)
    p["pcl_b2"] = b((c_lprior,), h_pcl)
    p["pcl_wg"] = w((c_lprior, c_gprior), c_lprior)
    p["pcl_bg"] = b((c_gprior,), c_lprior)
    # Deform_CorrespondingNet.assignment  (full model: 2048 -> 512 -> 256 -> n_cat*prior_num)
    ka = c_view + c_gprior
    p["a_w1_v"] = w((c_view, hid1), ka)        # view-feature columns of conv a1
    p["a_w1_g"] = w((c_gprior, hid1), ka)      # broadcast prior_global columns of conv a1
    p["a_b1"] = b((hid1,), ka)
    p["a_w2"] = w((hid1, hid2), hid1)
    p["a_b2"] = b((hid2,), hid1)
    p["a_w3"] = w((n_cat, hid2, prior_num), hid2)   # per-category head, obj_id-gathered
    p["a_b3"] = b((n_cat, 1, prior_num), hid2)
    # Deform_CorrespondingNet.deformation  (full model: 3334 -> 512 -> 256 -> n_cat*3)
    kd = c_lprior + c_gprior + c_view
    p["d_w1_l"] = w((c_lprior, hid1), kd)      # prior_local columns of conv d1
    p["d_w1_g"] = w((c_gprior, hid1), kd)      # broadcast prior_global columns
    p["d_w1_v"] = w((c_view, hid1), kd)        # tiled view-feature columns
    p["d_b1"] = b((hid1,), kd)
    p["d_w2"] = w((hid1, hid2), hid1)
    p["d_b2"] = b((hid2,), hid1)
    p["d_w3"] = w((n_cat, hid2, 3), hid2)      # per-category head, obj_id-sliced
    p["d_b3"] = b((n_cat, 1, 3), hid2)
    # TODO(synk): FaceRecon architecture not given; pointwise-MLP stand-in with
    # outputs (recon 3, face_shift_delta 18, face_log_var 6, mask 1); first layer
    # split column-wise so the wide concat is never materialized.
    kf = c_view + 3 + 18
    p["f_w1_v"] = w((c_view, hid_f), kf)       # view-feature columns
    p["f_w1_p"] = w((3, hid_f), kf)            # points_centered columns
    p["f_w1_s"] = w((18, hid_f), kf)           # face_shift_prior columns
    p["f_b1"] = b((hid_f,), kf)
    p["f_w2"] = w((hid_f, 28), hid_f)
    p["f_b2"] = b((28,), hid_f)
    return p


# -----------------------------------------------------------------------------
# Sub-modules
# -----------------------------------------------------------------------------
def prior_extra_net(params, obj_id, prior):
    """PriorExtraNet / PCL_Encoder stand-in: fused 2-layer per-point MLP + max-pool."""
    bs, prior_num, _ = prior.shape
    h_pcl = params["pcl_w1_p"].shape[1]
    c_lprior = params["pcl_w2"].shape[1]

    # one-hot(obj_id) @ W_cat is a row-select => per-batch bias (tiny, plain JAX).
    bias1 = params["pcl_w1_c"][obj_id].astype(jnp.float32) + params["pcl_b1"]   # (bs, h_pcl)

    tm = _row_tile(prior_num, target=512)
    grid = (bs, prior_num // tm)
    local_feat, pooled = pl.pallas_call(
        _pcl_encoder_kernel,
        out_shape=(jax.ShapeDtypeStruct((bs, prior_num, c_lprior), jnp.bfloat16),
                   jax.ShapeDtypeStruct((bs, 1, c_lprior), jnp.float32)),
        grid_spec=pltpu.PrefetchScalarGridSpec(
            num_scalar_prefetch=0,
            grid=grid,
            in_specs=[
                pl.BlockSpec((1, tm, 3), lambda b, i: (b, i, 0)),
                pl.BlockSpec((1, 1, h_pcl), lambda b, i: (b, 0, 0)),
                pl.BlockSpec((3, h_pcl), lambda b, i: (0, 0)),
                pl.BlockSpec((h_pcl, c_lprior), lambda b, i: (0, 0)),
                pl.BlockSpec((1, c_lprior), lambda b, i: (0, 0)),
            ],
            out_specs=[
                pl.BlockSpec((1, tm, c_lprior), lambda b, i: (b, i, 0)),
                pl.BlockSpec((1, 1, c_lprior), lambda b, i: (b, 0, 0)),
            ]),
        compiler_params=pltpu.CompilerParams(
            dimension_semantics=("parallel", "arbitrary"),
            vmem_limit_bytes=VMEM_LIMIT),
    )(prior, bias1.reshape(bs, 1, h_pcl),
      params["pcl_w1_p"], params["pcl_w2"], params["pcl_b2"].reshape(1, c_lprior))

    # Global head: (bs, c_lprior) @ (c_lprior, c_gprior) — too small for a kernel.
    prior_global = (jnp.dot(pooled[:, 0, :].astype(jnp.bfloat16), params["pcl_wg"],
                            preferred_element_type=jnp.float32) + params["pcl_bg"])
    return local_feat, prior_global


def deform_field_net(params, obj_id, prior, view_global_feats, prior_local, prior_global):
    """Deformation branch of Deform_CorrespondingNet (d1->d2->d3), obj_id head selection."""
    bs, prior_num, _ = prior.shape
    p_num = view_global_feats.shape[1]                       # 8 in the reference
    c_lprior = prior_local.shape[-1]
    hid1, hid2 = params["d_w2"].shape

    assert prior_num % p_num == 0, "prior_num must be a multiple of p_num (=8)"

    # First-layer split: broadcast(prior_global) + tiled(view_feats) + b1 become a
    # single per-batch (8, hid1) block, added with a broadcast inside the kernel.
    g_bias = (jnp.dot(prior_global.astype(jnp.bfloat16), params["d_w1_g"],
                      preferred_element_type=jnp.float32) + params["d_b1"])        # (bs, hid1)
    v_con = jnp.einsum("bpc,ch->bph", view_global_feats.astype(jnp.bfloat16),
                       params["d_w1_v"], preferred_element_type=jnp.float32)       # (bs, 8, hid1)
    vb = v_con + g_bias[:, None, :]                                                # (bs, 8, hid1)

    tm = _row_tile(prior_num, target=512)
    assert tm % p_num == 0
    rep = tm // p_num
    grid = (bs, prior_num // tm)

    deform_field = pl.pallas_call(
        functools.partial(_deform_mlp_kernel, rep=rep, p_num=p_num),
        out_shape=jax.ShapeDtypeStruct((bs, prior_num, 3), jnp.float32),
        grid_spec=pltpu.PrefetchScalarGridSpec(
            num_scalar_prefetch=1,
            grid=grid,
            in_specs=[
                pl.BlockSpec((1, tm, c_lprior), lambda b, i, oid: (b, i, 0)),
                pl.BlockSpec((1, p_num, hid1), lambda b, i, oid: (b, 0, 0)),
                pl.BlockSpec((c_lprior, hid1), lambda b, i, oid: (0, 0)),
                pl.BlockSpec((hid1, hid2), lambda b, i, oid: (0, 0)),
                pl.BlockSpec((1, hid2), lambda b, i, oid: (0, 0)),
                pl.BlockSpec((1, hid2, 3), lambda b, i, oid: (oid[b], 0, 0)),
                pl.BlockSpec((1, 1, 3), lambda b, i, oid: (oid[b], 0, 0)),
            ],
            out_specs=pl.BlockSpec((1, tm, 3), lambda b, i, oid: (b, i, 0))),
        compiler_params=pltpu.CompilerParams(
            dimension_semantics=("parallel", "parallel"),
            vmem_limit_bytes=VMEM_LIMIT),
    )(obj_id, prior_local, vb,
      params["d_w1_l"], params["d_w2"], params["d_b2"].reshape(1, hid2),
      params["d_w3"], params["d_b3"])
    return deform_field


def assign_and_nocs_net(params, obj_id, view_global_feats, prior_global, inst_shape):
    """Assignment branch (a1->a2->a3) fused with softmax + BMM (get_nocs_from_deform).
    Batch-packed: Bt batch items (M = Bt*8 rows) per grid step."""
    bs, p_num, c_view = view_global_feats.shape
    prior_num = inst_shape.shape[1]
    hid1, hid2 = params["a_w2"].shape

    g_bias = (jnp.dot(prior_global.astype(jnp.bfloat16), params["a_w1_g"],
                      preferred_element_type=jnp.float32) + params["a_b1"])        # (bs, hid1)
    # Per-category head gathered by obj_id in the wrapper (tiny, plain JAX gather).
    w3_sel = params["a_w3"][obj_id]            # (bs, hid2, prior_num) bf16
    b3_sel = params["a_b3"][obj_id]            # (bs, 1, prior_num)   f32

    bt = _batch_tile(bs, p_num)
    grid = (bs // bt,)

    assign_mat, nocs_pred = pl.pallas_call(
        _assign_softmax_bmm_kernel,
        out_shape=(jax.ShapeDtypeStruct((bs, p_num, prior_num), jnp.float32),
                   jax.ShapeDtypeStruct((bs, p_num, 3), jnp.float32)),
        grid_spec=pltpu.PrefetchScalarGridSpec(
            num_scalar_prefetch=0,
            grid=grid,
            in_specs=[
                pl.BlockSpec((bt, p_num, c_view), lambda b: (b, 0, 0)),
                pl.BlockSpec((bt, 1, hid1), lambda b: (b, 0, 0)),
                pl.BlockSpec((c_view, hid1), lambda b: (0, 0)),
                pl.BlockSpec((hid1, hid2), lambda b: (0, 0)),
                pl.BlockSpec((1, hid2), lambda b: (0, 0)),
                pl.BlockSpec((bt, hid2, prior_num), lambda b: (b, 0, 0)),
                pl.BlockSpec((bt, 1, prior_num), lambda b: (b, 0, 0)),
                pl.BlockSpec((bt, prior_num, 3), lambda b: (b, 0, 0)),
            ],
            out_specs=[
                pl.BlockSpec((bt, p_num, prior_num), lambda b: (b, 0, 0)),
                pl.BlockSpec((bt, p_num, 3), lambda b: (b, 0, 0)),
            ]),
        compiler_params=pltpu.CompilerParams(
            dimension_semantics=("parallel",),
            vmem_limit_bytes=VMEM_LIMIT),
    )(view_global_feats, g_bias.reshape(bs, 1, hid1),
      params["a_w1_v"], params["a_w2"], params["a_b2"].reshape(1, hid2),
      w3_sel, b3_sel, inst_shape)
    return nocs_pred, assign_mat


def get_face_dis_from_nocs(nocs, mean_shape):
    # TODO(synk): helper undefined in reference; signed distances to the 6 bbox faces.
    half = mean_shape[:, None, :] * 0.5                                  # (bs, 1, 3)
    dp = half - nocs
    dn = half + nocs
    # face order: [x+, x-, y+, y-, z+, z-]
    return jnp.stack([dp[..., 0], dn[..., 0], dp[..., 1], dn[..., 1],
                      dp[..., 2], dn[..., 2]], axis=-1)                  # (bs, N, 6)


def get_face_shift_from_dis(face_dis, p_green_R, p_red_R, f_green_R, f_red_R,
                            use_rectify_normal=0):
    # TODO(synk): helper undefined in reference; face shift = dis * predicted face normal
    # (f_green_R / f_red_R confidences accepted but unused, as in the stand-in).
    def _norm(v):
        return v / (jnp.linalg.norm(v, axis=-1, keepdims=True) + 1e-8)
    green = _norm(p_green_R)                       # predicted y-axis
    red = _norm(p_red_R)                           # predicted x-axis
    blue = _norm(jnp.cross(red, green))            # derived z-axis
    normals = jnp.stack([red, -red, green, -green, blue, -blue], axis=1)  # (bs, 6, 3)
    shift = face_dis[..., None] * normals[:, None, :, :]                  # (bs, N, 6, 3)
    bs, n = face_dis.shape[0], face_dis.shape[1]
    return shift.reshape(bs, n, 18)


def face_recon_net(params, feat_global_obs, points_centered, face_shift_prior):
    """FaceRecon stand-in: fused 2-layer pointwise MLP -> [recon 3 | delta 18 | logvar 6 | mask 1].
    First layer split column-wise (no wide concat); output padded to a lane-dense 128 cols."""
    bs, p_num, c_view = feat_global_obs.shape
    hid_f = params["f_w1_v"].shape[1]
    cout = params["f_w2"].shape[1]
    cout_pad = ((cout + 127) // 128) * 128

    # Small-K (3 + 18) contributions become per-row biases (tiny wrapper matmuls).
    bias_rows = (jnp.einsum("bpc,ch->bph", points_centered,
                            params["f_w1_p"].astype(jnp.float32))
                 + jnp.einsum("bpc,ch->bph", face_shift_prior,
                              params["f_w1_s"].astype(jnp.float32))
                 + params["f_b1"])                                        # (bs, 8, hid_f)

    w2p = jnp.pad(params["f_w2"], ((0, 0), (0, cout_pad - cout)))
    b2p = jnp.pad(params["f_b2"], ((0, cout_pad - cout),)).reshape(1, cout_pad)

    bt = _batch_tile(bs, p_num)
    grid = (bs // bt,)

    out = pl.pallas_call(
        _face_recon_kernel,
        out_shape=jax.ShapeDtypeStruct((bs, p_num, cout_pad), jnp.float32),
        grid_spec=pltpu.PrefetchScalarGridSpec(
            num_scalar_prefetch=0,
            grid=grid,
            in_specs=[
                pl.BlockSpec((bt, p_num, c_view), lambda b: (b, 0, 0)),
                pl.BlockSpec((bt, p_num, hid_f), lambda b: (b, 0, 0)),
                pl.BlockSpec((c_view, hid_f), lambda b: (0, 0)),
                pl.BlockSpec((hid_f, cout_pad), lambda b: (0, 0)),
                pl.BlockSpec((1, cout_pad), lambda b: (0, 0)),
            ],
            out_specs=pl.BlockSpec((bt, p_num, cout_pad), lambda b: (b, 0, 0))),
        compiler_params=pltpu.CompilerParams(
            dimension_semantics=("parallel",),
            vmem_limit_bytes=VMEM_LIMIT),
    )(feat_global_obs, bias_rows, params["f_w1_v"], w2p, b2p)

    recon = out[..., 0:3]
    face_shift_delta = out[..., 3:21]
    face_log_var = out[..., 21:27]
    mask = out[..., 27:28]
    return recon, face_shift_delta, face_log_var, mask


def res_normal_net(params, nocs_pred, p_green_R, p_red_R, f_green_R, f_red_R,
                   view_global_feats, points, mean_shape):
    feat_global_obs = view_global_feats
    face_dis_prior = get_face_dis_from_nocs(nocs_pred, mean_shape)
    face_shift_prior = get_face_shift_from_dis(
        face_dis_prior, p_green_R, p_red_R, f_green_R, f_red_R, use_rectify_normal=0)
    pts_mean = jnp.mean(points, axis=1, keepdims=True)
    recon, face_shift_delta, face_log_var, _mask = face_recon_net(
        params, feat_global_obs, points - pts_mean, face_shift_prior)
    recon = recon + pts_mean
    face_shift = face_shift_delta + face_shift_prior
    return face_shift, recon, face_shift_delta, face_log_var


def spd_bbox_normal_net(params, points, obj_id, prior, mean_shape,
                        view_global_feats, p_green_R, p_red_R, f_green_R, f_red_R):
    obj_id = obj_id.astype(jnp.int32)
    prior_local, prior_global = prior_extra_net(params, obj_id, prior)
    deform_field = deform_field_net(
        params, obj_id, prior, view_global_feats, prior_local, prior_global)
    # TODO(synk): get_nocs_from_deform undefined in reference; standard SPD formula
    # nocs = softmax(assign_mat, -1) @ (prior + deform_field), fused into the
    # assignment kernel below.
    inst_shape = prior + deform_field
    nocs_pred, assign_mat = assign_and_nocs_net(
        params, obj_id, view_global_feats, prior_global, inst_shape)
    face_shift, recon, face_shift_delta, face_log_var = res_normal_net(
        params, nocs_pred, p_green_R, p_red_R, f_green_R, f_red_R,
        view_global_feats, points, mean_shape)
    return {
        "face_shift": face_shift,
        "assign_mat": assign_mat,
        "deform_field": deform_field,
        "recon": recon,
        "face_shift_delta": face_shift_delta,
        "face_log_var": face_log_var,
    }


# -----------------------------------------------------------------------------
# Demo
# -----------------------------------------------------------------------------
if __name__ == "__main__":
    # Small, lane-friendly configuration consistent with the module
    # (full model: prior_num=1024, c_view=1286, c_gprior=762, hid1/hid2=512/256).
    bs, n_cat, prior_num, p_num = 2, 6, 128, 8
    c_view, c_gprior, c_lprior = 128, 128, 128
    h_pcl, hid1, hid2, hid_f = 64, 128, 128, 128

    key = jax.random.PRNGKey(0)
    kp, ki = jax.random.split(key)
    params = init_params(kp, n_cat=n_cat, prior_num=prior_num, c_view=c_view,
                         c_gprior=c_gprior, c_lprior=c_lprior,
                         h_pcl=h_pcl, hid1=hid1, hid2=hid2, hid_f=hid_f)

    k = jax.random.split(ki, 9)
    points = jax.random.normal(k[0], (bs, p_num, 3), jnp.float32)
    obj_id = jax.random.randint(k[1], (bs,), 0, n_cat, jnp.int32)
    prior = jax.random.normal(k[2], (bs, prior_num, 3), jnp.float32) * 0.1
    mean_shape = jnp.abs(jax.random.normal(k[3], (bs, 3), jnp.float32)) + 0.5
    view_global_feats = jax.random.normal(k[4], (bs, p_num, c_view), jnp.float32)
    p_green_R = jax.random.normal(k[5], (bs, 3), jnp.float32)
    p_red_R = jax.random.normal(k[6], (bs, 3), jnp.float32)
    f_green_R = jax.nn.sigmoid(jax.random.normal(k[7], (bs, 1), jnp.float32))
    f_red_R = jax.nn.sigmoid(jax.random.normal(k[8], (bs, 1), jnp.float32))

    fwd = jax.jit(spd_bbox_normal_net)
    out = fwd(params, points, obj_id, prior, mean_shape, view_global_feats,
              p_green_R, p_red_R, f_green_R, f_red_R)
    jax.block_until_ready(out)

    assert out["face_shift"].shape == (bs, p_num, 18)
    assert out["assign_mat"].shape == (bs, p_num, prior_num)
    assert out["deform_field"].shape == (bs, prior_num, 3)
    assert out["recon"].shape == (bs, p_num, 3)
    assert out["face_shift_delta"].shape == (bs, p_num, 18)
    assert out["face_log_var"].shape == (bs, p_num, 6)
    assert all(bool(jnp.all(jnp.isfinite(v))) for v in out.values())
    print("KERNEL_OK")
</pallas_src>

<mosaic_0001>
module attributes {stable_mosaic.version = 11 : i64} {
  func.func @_pcl_encoder_kernel(%arg0: i32, %arg1: i32, %arg2: memref<1x128x3xf32, #tpu.memory_space<vmem>>, %arg3: memref<1x1x64xf32, #tpu.memory_space<vmem>>, %arg4: memref<3x64xbf16, #tpu.memory_space<vmem>>, %arg5: memref<64x128xbf16, #tpu.memory_space<vmem>>, %arg6: memref<1x128xf32, #tpu.memory_space<vmem>>, %arg7: memref<1x128x128xbf16, #tpu.memory_space<vmem>>, %arg8: memref<1x1x128xf32, #tpu.memory_space<vmem>>) attributes {dimension_semantics = [#tpu.dimension_semantics<parallel>, #tpu.dimension_semantics<arbitrary>], iteration_bounds = array<i64: 2, 1>, scalar_prefetch = 0 : i64, scratch_operands = 0 : i64, tpu.core_type = #tpu.core_type<tc>, window_params = [{transform_indices = @transform_0, window_bounds = array<i64: 1, 128, 3>}, {transform_indices = @transform_1, window_bounds = array<i64: 1, 1, 64>}, {pipeline_mode = #tpu.pipeline_mode<synchronous>, transform_indices = @transform_2, window_bounds = array<i64: 3, 64>}, {pipeline_mode = #tpu.pipeline_mode<synchronous>, transform_indices = @transform_3, window_bounds = array<i64: 64, 128>}, {pipeline_mode = #tpu.pipeline_mode<synchronous>, transform_indices = @transform_4, window_bounds = array<i64: 1, 128>}, {transform_indices = @transform_5, window_bounds = array<i64: 1, 128, 128>}, {transform_indices = @transform_6, window_bounds = array<i64: 1, 1, 128>}]} {
    %c0_i32 = arith.constant 0 : i32
    %0 = arith.cmpi eq, %arg1, %c0_i32 : i32
    %1 = arith.extui %0 : i1 to i32
    %c0_i32_0 = arith.constant 0 : i32
    %2 = arith.cmpi ne, %1, %c0_i32_0 : i32
    scf.if %2 {
      %cst_24 = arith.constant 0.000000e+00 : f32
      %50 = vector.broadcast %cst_24 : f32 to vector<1x1x128xf32>
      %c0_25 = arith.constant 0 : index
      %c0_26 = arith.constant 0 : index
      %c0_27 = arith.constant 0 : index
      %51 = vector.load %arg8[%c0_25, %c0_26, %c0_27] : memref<1x1x128xf32, #tpu.memory_space<vmem>>, vector<1x1x128xf32>
      tpu.vector_store %arg8[%c0_25, %c0_26, %c0_27], %50 {strides = array<i32>} : memref<1x1x128xf32, #tpu.memory_space<vmem>>, vector<1x1x128xf32>,
    } else {
    }
    %c0 = arith.constant 0 : index
    %c0_1 = arith.constant 0 : index
    %c0_2 = arith.constant 0 : index
    %3 = vector.load %arg2[%c0, %c0_1, %c0_2] : memref<1x128x3xf32, #tpu.memory_space<vmem>>, vector<1x128x3xf32>
    %4 = vector.shape_cast %3 : vector<1x128x3xf32> to vector<128x3xf32>
    %c0_3 = arith.constant 0 : index
    %c0_4 = arith.constant 0 : index
    %5 = vector.load %arg4[%c0_3, %c0_4] : memref<3x64xbf16, #tpu.memory_space<vmem>>, vector<3x64xbf16>
    %6 = arith.extf %5 : vector<3x64xbf16> to vector<3x64xf32>
    %7 = vector.extract_strided_slice %4 {offsets = [0, 0], sizes = [128, 1], strides = [1, 1]} : vector<128x3xf32> to vector<128x1xf32>
    %8 = vector.extract_strided_slice %6 {offsets = [0, 0], sizes = [1, 64], strides = [1, 1]} : vector<3x64xf32> to vector<1x64xf32>
    %9 = vector.broadcast %7 : vector<128x1xf32> to vector<128x64xf32>
    %10 = vector.broadcast %8 : vector<1x64xf32> to vector<128x64xf32>
    %11 = arith.mulf %9, %10 : vector<128x64xf32>
    %12 = vector.extract_strided_slice %4 {offsets = [0, 1], sizes = [128, 1], strides = [1, 1]} : vector<128x3xf32> to vector<128x1xf32>
    %13 = vector.extract_strided_slice %6 {offsets = [1, 0], sizes = [1, 64], strides = [1, 1]} : vector<3x64xf32> to vector<1x64xf32>
    %14 = vector.broadcast %12 : vector<128x1xf32> to vector<128x64xf32>
    %15 = vector.broadcast %13 : vector<1x64xf32> to vector<128x64xf32>
    %16 = arith.mulf %14, %15 : vector<128x64xf32>
    %17 = arith.addf %11, %16 : vector<128x64xf32>
    %18 = vector.extract_strided_slice %4 {offsets = [0, 2], sizes = [128, 1], strides = [1, 1]} : vector<128x3xf32> to vector<128x1xf32>
    %19 = vector.extract_strided_slice %6 {offsets = [2, 0], sizes = [1, 64], strides = [1, 1]} : vector<3x64xf32> to vector<1x64xf32>
    %20 = vector.broadcast %18 : vector<128x1xf32> to vector<128x64xf32>
    %21 = vector.broadcast %19 : vector<1x64xf32> to vector<128x64xf32>
    %22 = arith.mulf %20, %21 : vector<128x64xf32>
    %23 = arith.addf %17, %22 : vector<128x64xf32>
    %c0_5 = arith.constant 0 : index
    %c0_6 = arith.constant 0 : index
    %c0_7 = arith.constant 0 : index
    %24 = vector.load %arg3[%c0_5, %c0_6, %c0_7] : memref<1x1x64xf32, #tpu.memory_space<vmem>>, vector<1x1x64xf32>
    %25 = vector.shape_cast %24 : vector<1x1x64xf32> to vector<1x64xf32>
    %26 = vector.broadcast %25 : vector<1x64xf32> to vector<128x64xf32>
    %27 = arith.addf %23, %26 : vector<128x64xf32>
    %cst = arith.constant 0.000000e+00 : f32
    %28 = vector.broadcast %cst : f32 to vector<128x64xf32>
    %29 = arith.maximumf %27, %28 : vector<128x64xf32>
    %30 = arith.truncf %29 : vector<128x64xf32> to vector<128x64xbf16>
    %c0_8 = arith.constant 0 : index
    %c0_9 = arith.constant 0 : index
    %31 = vector.load %arg5[%c0_8, %c0_9] : memref<64x128xbf16, #tpu.memory_space<vmem>>, vector<64x128xbf16>
    %cst_10 = arith.constant dense<0.000000e+00> : vector<128x128xf32>
    %32 = tpu.matmul %30, %31, %cst_10 {dimension_numbers = #tpu.dot_dimension_numbers<[1], [0], [0], [1], [0, 0, 1, 1], [], []>} : vector<128x64xbf16>, vector<64x128xbf16>, vector<128x128xf32> -> vector<128x128xf32>
    %c0_11 = arith.constant 0 : index
    %c0_12 = arith.constant 0 : index
    %33 = vector.load %arg6[%c0_11, %c0_12] : memref<1x128xf32, #tpu.memory_space<vmem>>, vector<1x128xf32>
    %34 = vector.broadcast %33 : vector<1x128xf32> to vector<128x128xf32>
    %35 = arith.addf %32, %34 : vector<128x128xf32>
    %cst_13 = arith.constant 0.000000e+00 : f32
    %36 = vector.broadcast %cst_13 : f32 to vector<128x128xf32>
    %37 = arith.maximumf %35, %36 : vector<128x128xf32>
    %38 = arith.truncf %37 : vector<128x128xf32> to vector<128x128xbf16>
    %c0_14 = arith.constant 0 : index
    %c0_15 = arith.constant 0 : index
    %c0_16 = arith.constant 0 : index
    %39 = vector.load %arg7[%c0_14, %c0_15, %c0_16] : memref<1x128x128xbf16, #tpu.memory_space<vmem>>, vector<1x128x128xbf16>
    %40 = vector.shape_cast %39 : vector<1x128x128xbf16> to vector<128x128xbf16>
    %41 = vector.shape_cast %38 : vector<128x128xbf16> to vector<1x128x128xbf16>
    tpu.vector_store %arg7[%c0_14, %c0_15, %c0_16], %41 {strides = array<i32>} : memref<1x128x128xbf16, #tpu.memory_space<vmem>>, vector<1x128x128xbf16>,
    %c0_17 = arith.constant 0 : index
    %c0_18 = arith.constant 0 : index
    %c0_19 = arith.constant 0 : index
    %42 = vector.load %arg8[%c0_17, %c0_18, %c0_19] : memref<1x1x128xf32, #tpu.memory_space<vmem>>, vector<1x1x128xf32>
    %43 = vector.shape_cast %42 : vector<1x1x128xf32> to vector<1x128xf32>
    %cst_20 = arith.constant dense<0xFF800000> : vector<128xf32>
    %44 = vector.multi_reduction <maximumf>, %37, %cst_20 [0] : vector<128x128xf32> to vector<128xf32>
    %45 = vector.shape_cast %44 : vector<128xf32> to vector<1x128xf32>
    %46 = arith.maximumf %43, %45 : vector<1x128xf32>
    %c0_21 = arith.constant 0 : index
    %c0_22 = arith.constant 0 : index
    %c0_23 = arith.constant 0 : index
    %47 = vector.load %arg8[%c0_21, %c0_22, %c0_23] : memref<1x1x128xf32, #tpu.memory_space<vmem>>, vector<1x1x128xf32>
    %48 = vector.shape_cast %47 : vector<1x1x128xf32> to vector<1x128xf32>
    %49 = vector.shape_cast %46 : vector<1x128xf32> to vector<1x1x128xf32>
    tpu.vector_store %arg8[%c0_21, %c0_22, %c0_23], %49 {strides = array<i32>} : memref<1x1x128xf32, #tpu.memory_space<vmem>>, vector<1x1x128xf32>,
    return
  }
  func.func @transform_0(%arg0: i32, %arg1: i32) -> (i32, i32, i32) {
    %c0_i32 = arith.constant 0 : i32
    %c0_i32_0 = arith.constant 0 : i32
    return %arg0, %arg1, %c0_i32 : i32, i32, i32
  }
  func.func @transform_1(%arg0: i32, %arg1: i32) -> (i32, i32, i32) {
    %c0_i32 = arith.constant 0 : i32
    %c0_i32_0 = arith.constant 0 : i32
    %c0_i32_1 = arith.constant 0 : i32
    return %arg0, %c0_i32, %c0_i32_0 : i32, i32, i32
  }
  func.func @transform_2(%arg0: i32, %arg1: i32) -> (i32, i32) {
    %c0_i32 = arith.constant 0 : i32
    %c0_i32_0 = arith.constant 0 : i32
    %c0_i32_1 = arith.constant 0 : i32
    return %c0_i32, %c0_i32_0 : i32, i32
  }
  func.func @transform_3(%arg0: i32, %arg1: i32) -> (i32, i32) {
    %c0_i32 = arith.constant 0 : i32
    %c0_i32_0 = arith.constant 0 : i32
    %c0_i32_1 = arith.constant 0 : i32
    return %c0_i32, %c0_i32_0 : i32, i32
  }
  func.func @transform_4(%arg0: i32, %arg1: i32) -> (i32, i32) {
    %c0_i32 = arith.constant 0 : i32
    %c0_i32_0 = arith.constant 0 : i32
    %c0_i32_1 = arith.constant 0 : i32
    return %c0_i32, %c0_i32_0 : i32, i32
  }
  func.func @transform_5(%arg0: i32, %arg1: i32) -> (i32, i32, i32) {
    %c0_i32 = arith.constant 0 : i32
    %c0_i32_0 = arith.constant 0 : i32
    return %arg0, %arg1, %c0_i32 : i32, i32, i32
  }
  func.func @transform_6(%arg0: i32, %arg1: i32) -> (i32, i32, i32) {
    %c0_i32 = arith.constant 0 : i32
    %c0_i32_0 = arith.constant 0 : i32
    %c0_i32_1 = arith.constant 0 : i32
    return %arg0, %c0_i32, %c0_i32_0 : i32, i32, i32
  }
}

module attributes {stable_mosaic.version = 11 : i64} {
  func.func @_deform_mlp_kernel(%arg0: i32, %arg1: i32, %arg2: memref<2xi32, #tpu.memory_space<smem>>, %arg3: memref<1x128x128xbf16, #tpu.memory_space<vmem>>, %arg4: memref<1x8x128xf32, #tpu.memory_space<vmem>>, %arg5: memref<128x128xbf16, #tpu.memory_space<vmem>>, %arg6: memref<128x128xbf16, #tpu.memory_space<vmem>>, %arg7: memref<1x128xf32, #tpu.memory_space<vmem>>, %arg8: memref<1x128x3xbf16, #tpu.memory_space<vmem>>, %arg9: memref<1x1x3xf32, #tpu.memory_space<vmem>>, %arg10: memref<1x128x3xf32, #tpu.memory_space<vmem>>) attributes {dimension_semantics = [#tpu.dimension_semantics<parallel>, #tpu.dimension_semantics<parallel>], iteration_bounds = array<i64: 2, 1>, scalar_prefetch = 1 : i64, scratch_operands = 0 : i64, tpu.core_type = #tpu.core_type<tc>, window_params = [{transform_indices = @transform_0, window_bounds = array<i64: 1, 128, 128>}, {transform_indices = @transform_1, window_bounds = array<i64: 1, 8, 128>}, {pipeline_mode = #tpu.pipeline_mode<synchronous>, transform_indices = @transform_2, window_bounds = array<i64: 128, 128>}, {pipeline_mode = #tpu.pipeline_mode<synchronous>, transform_indices = @transform_3, window_bounds = array<i64: 128, 128>}, {pipeline_mode = #tpu.pipeline_mode<synchronous>, transform_indices = @transform_4, window_bounds = array<i64: 1, 128>}, {transform_indices = @transform_5, window_bounds = array<i64: 1, 128, 3>}, {transform_indices = @transform_6, window_bounds = array<i64: 1, 1, 3>}, {transform_indices = @transform_7, window_bounds = array<i64: 1, 128, 3>}]} {
    %c0 = arith.constant 0 : index
    %c0_0 = arith.constant 0 : index
    %c0_1 = arith.constant 0 : index
    %0 = vector.load %arg3[%c0, %c0_0, %c0_1] : memref<1x128x128xbf16, #tpu.memory_space<vmem>>, vector<1x128x128xbf16>
    %1 = vector.shape_cast %0 : vector<1x128x128xbf16> to vector<128x128xbf16>
    %c0_2 = arith.constant 0 : index
    %c0_3 = arith.constant 0 : index
    %2 = vector.load %arg5[%c0_2, %c0_3] : memref<128x128xbf16, #tpu.memory_space<vmem>>, vector<128x128xbf16>
    %cst = arith.constant dense<0.000000e+00> : vector<128x128xf32>
    %3 = tpu.matmul %1, %2, %cst {dimension_numbers = #tpu.dot_dimension_numbers<[1], [0], [0], [1], [0, 0, 1, 1], [], []>} : vector<128x128xbf16>, vector<128x128xbf16>, vector<128x128xf32> -> vector<128x128xf32>
    %4 = vector.shape_cast %3 : vector<128x128xf32> to vector<16x8x128xf32>
    %c0_4 = arith.constant 0 : index
    %c0_5 = arith.constant 0 : index
    %c0_6 = arith.constant 0 : index
    %5 = vector.load %arg4[%c0_4, %c0_5, %c0_6] : memref<1x8x128xf32, #tpu.memory_space<vmem>>, vector<1x8x128xf32>
    %6 = vector.shape_cast %5 : vector<1x8x128xf32> to vector<8x128xf32>
    %7 = vector.shape_cast %6 : vector<8x128xf32> to vector<1x8x128xf32>
    %8 = vector.broadcast %7 : vector<1x8x128xf32> to vector<16x8x128xf32>
    %9 = arith.addf %4, %8 : vector<16x8x128xf32>
    %10 = vector.shape_cast %9 : vector<16x8x128xf32> to vector<128x128xf32>
    %cst_7 = arith.constant 0.000000e+00 : f32
    %11 = vector.broadcast %cst_7 : f32 to vector<128x128xf32>
    %12 = arith.maximumf %10, %11 : vector<128x128xf32>
    %13 = arith.truncf %12 : vector<128x128xf32> to vector<128x128xbf16>
    %c0_8 = arith.constant 0 : index
    %c0_9 = arith.constant 0 : index
    %14 = vector.load %arg6[%c0_8, %c0_9] : memref<128x128xbf16, #tpu.memory_space<vmem>>, vector<128x128xbf16>
    %cst_10 = arith.constant dense<0.000000e+00> : vector<128x128xf32>
    %15 = tpu.matmul %13, %14, %cst_10 {dimension_numbers = #tpu.dot_dimension_numbers<[1], [0], [0], [1], [0, 0, 1, 1], [], []>} : vector<128x128xbf16>, vector<128x128xbf16>, vector<128x128xf32> -> vector<128x128xf32>
    %c0_11 = arith.constant 0 : index
    %c0_12 = arith.constant 0 : index
    %16 = vector.load %arg7[%c0_11, %c0_12] : memref<1x128xf32, #tpu.memory_space<vmem>>, vector<1x128xf32>
    %17 = vector.broadcast %16 : vector<1x128xf32> to vector<128x128xf32>
    %18 = arith.addf %15, %17 : vector<128x128xf32>
    %cst_13 = arith.constant 0.000000e+00 : f32
    %19 = vector.broadcast %cst_13 : f32 to vector<128x128xf32>
    %20 = arith.maximumf %18, %19 : vector<128x128xf32>
    %21 = arith.truncf %20 : vector<128x128xf32> to vector<128x128xbf16>
    %c0_14 = arith.constant 0 : index
    %c0_15 = arith.constant 0 : index
    %c0_16 = arith.constant 0 : index
    %22 = vector.load %arg8[%c0_14, %c0_15, %c0_16] : memref<1x128x3xbf16, #tpu.memory_space<vmem>>, vector<1x128x3xbf16>
    %23 = vector.shape_cast %22 : vector<1x128x3xbf16> to vector<128x3xbf16>
    %cst_17 = arith.constant dense<0.000000e+00> : vector<128x3xf32>
    %24 = tpu.matmul %21, %23, %cst_17 {dimension_numbers = #tpu.dot_dimension_numbers<[1], [0], [0], [1], [0, 0, 1, 1], [], []>} : vector<128x128xbf16>, vector<128x3xbf16>, vector<128x3xf32> -> vector<128x3xf32>
    %c0_18 = arith.constant 0 : index
    %c0_19 = arith.constant 0 : index
    %c0_20 = arith.constant 0 : index
    %25 = vector.load %arg9[%c0_18, %c0_19, %c0_20] : memref<1x1x3xf32, #tpu.memory_space<vmem>>, vector<1x1x3xf32>
    %26 = vector.shape_cast %25 : vector<1x1x3xf32> to vector<1x3xf32>
    %27 = vector.broadcast %26 : vector<1x3xf32> to vector<128x3xf32>
    %28 = arith.addf %24, %27 : vector<128x3xf32>
    %c0_21 = arith.constant 0 : index
    %c0_22 = arith.constant 0 : index
    %c0_23 = arith.constant 0 : index
    %29 = vector.load %arg10[%c0_21, %c0_22, %c0_23] : memref<1x128x3xf32, #tpu.memory_space<vmem>>, vector<1x128x3xf32>
    %30 = vector.shape_cast %29 : vector<1x128x3xf32> to vector<128x3xf32>
    %31 = vector.shape_cast %28 : vector<128x3xf32> to vector<1x128x3xf32>
    tpu.vector_store %arg10[%c0_21, %c0_22, %c0_23], %31 {strides = array<i32>} : memref<1x128x3xf32, #tpu.memory_space<vmem>>, vector<1x128x3xf32>,
    return
  }
  func.func @transform_0(%arg0: i32, %arg1: i32, %arg2: memref<2xi32, #tpu.memory_space<smem>>) -> (i32, i32, i32) {
    %c0_i32 = arith.constant 0 : i32
    %c0_i32_0 = arith.constant 0 : i32
    return %arg0, %arg1, %c0_i32 : i32, i32, i32
  }
  func.func @transform_1(%arg0: i32, %arg1: i32, %arg2: memref<2xi32, #tpu.memory_space<smem>>) -> (i32, i32, i32) {
    %c0_i32 = arith.constant 0 : i32
    %c0_i32_0 = arith.constant 0 : i32
    %c0_i32_1 = arith.constant 0 : i32
    return %arg0, %c0_i32, %c0_i32_0 : i32, i32, i32
  }
  func.func @transform_2(%arg0: i32, %arg1: i32, %arg2: memref<2xi32, #tpu.memory_space<smem>>) -> (i32, i32) {
    %c0_i32 = arith.constant 0 : i32
    %c0_i32_0 = arith.constant 0 : i32
    %c0_i32_1 = arith.constant 0 : i32
    return %c0_i32, %c0_i32_0 : i32, i32
  }
  func.func @transform_3(%arg0: i32, %arg1: i32, %arg2: memref<2xi32, #tpu.memory_space<smem>>) -> (i32, i32) {
    %c0_i32 = arith.constant 0 : i32
    %c0_i32_0 = arith.constant 0 : i32
    %c0_i32_1 = arith.constant 0 : i32
    return %c0_i32, %c0_i32_0 : i32, i32
  }
  func.func @transform_4(%arg0: i32, %arg1: i32, %arg2: memref<2xi32, #tpu.memory_space<smem>>) -> (i32, i32) {
    %c0_i32 = arith.constant 0 : i32
    %c0_i32_0 = arith.constant 0 : i32
    %c0_i32_1 = arith.constant 0 : i32
    return %c0_i32, %c0_i32_0 : i32, i32
  }
  func.func @transform_5(%arg0: i32, %arg1: i32, %arg2: memref<2xi32, #tpu.memory_space<smem>>) -> (i32, i32, i32) {
    %0 = arith.index_cast %arg0 : i32 to index
    %1 = memref.load %arg2[%0] : memref<2xi32, #tpu.memory_space<smem>>
    %c0_i32 = arith.constant 0 : i32
    %c0_i32_0 = arith.constant 0 : i32
    %c0_i32_1 = arith.constant 0 : i32
    return %1, %c0_i32, %c0_i32_0 : i32, i32, i32
  }
  func.func @transform_6(%arg0: i32, %arg1: i32, %arg2: memref<2xi32, #tpu.memory_space<smem>>) -> (i32, i32, i32) {
    %0 = arith.index_cast %arg0 : i32 to index
    %1 = memref.load %arg2[%0] : memref<2xi32, #tpu.memory_space<smem>>
    %c0_i32 = arith.constant 0 : i32
    %c0_i32_0 = arith.constant 0 : i32
    %c0_i32_1 = arith.constant 0 : i32
    return %1, %c0_i32, %c0_i32_0 : i32, i32, i32
  }
  func.func @transform_7(%arg0: i32, %arg1: i32, %arg2: memref<2xi32, #tpu.memory_space<smem>>) -> (i32, i32, i32) {
    %c0_i32 = arith.constant 0 : i32
    %c0_i32_0 = arith.constant 0 : i32
    return %arg0, %arg1, %c0_i32 : i32, i32, i32
  }
}

module attributes {stable_mosaic.version = 11 : i64} {
  func.func @_assign_softmax_bmm_kernel(%arg0: i32, %arg1: memref<1x8x128xf32, #tpu.memory_space<vmem>>, %arg2: memref<1x1x128xf32, #tpu.memory_space<vmem>>, %arg3: memref<128x128xbf16, #tpu.memory_space<vmem>>, %arg4: memref<128x128xbf16, #tpu.memory_space<vmem>>, %arg5: memref<1x128xf32, #tpu.memory_space<vmem>>, %arg6: memref<1x128x128xbf16, #tpu.memory_space<vmem>>, %arg7: memref<1x1x128xf32, #tpu.memory_space<vmem>>, %arg8: memref<1x128x3xf32, #tpu.memory_space<vmem>>, %arg9: memref<1x8x128xf32, #tpu.memory_space<vmem>>, %arg10: memref<1x8x3xf32, #tpu.memory_space<vmem>>) attributes {dimension_semantics = [#tpu.dimension_semantics<parallel>], iteration_bounds = array<i64: 2>, scalar_prefetch = 0 : i64, scratch_operands = 0 : i64, tpu.core_type = #tpu.core_type<tc>, window_params = [{transform_indices = @transform_0, window_bounds = array<i64: 1, 8, 128>}, {transform_indices = @transform_1, window_bounds = array<i64: 1, 1, 128>}, {pipeline_mode = #tpu.pipeline_mode<synchronous>, transform_indices = @transform_2, window_bounds = array<i64: 128, 128>}, {pipeline_mode = #tpu.pipeline_mode<synchronous>, transform_indices = @transform_3, window_bounds = array<i64: 128, 128>}, {pipeline_mode = #tpu.pipeline_mode<synchronous>, transform_indices = @transform_4, window_bounds = array<i64: 1, 128>}, {transform_indices = @transform_5, window_bounds = array<i64: 1, 128, 128>}, {transform_indices = @transform_6, window_bounds = array<i64: 1, 1, 128>}, {transform_indices = @transform_7, window_bounds = array<i64: 1, 128, 3>}, {transform_indices = @transform_8, window_bounds = array<i64: 1, 8, 128>}, {transform_indices = @transform_9, window_bounds = array<i64: 1, 8, 3>}]} {
    %c0 = arith.constant 0 : index
    %c0_0 = arith.constant 0 : index
    %c0_1 = arith.constant 0 : index
    %0 = vector.load %arg1[%c0, %c0_0, %c0_1] : memref<1x8x128xf32, #tpu.memory_space<vmem>>, vector<1x8x128xf32>
    %1 = vector.shape_cast %0 : vector<1x8x128xf32> to vector<8x128xf32>
    %2 = arith.truncf %1 : vector<8x128xf32> to vector<8x128xbf16>
    %c0_2 = arith.constant 0 : index
    %c0_3 = arith.constant 0 : index
    %3 = vector.load %arg3[%c0_2, %c0_3] : memref<128x128xbf16, #tpu.memory_space<vmem>>, vector<128x128xbf16>
    %cst = arith.constant dense<0.000000e+00> : vector<8x128xf32>
    %4 = tpu.matmul %2, %3, %cst {dimension_numbers = #tpu.dot_dimension_numbers<[1], [0], [0], [1], [0, 0, 1, 1], [], []>} : vector<8x128xbf16>, vector<128x128xbf16>, vector<8x128xf32> -> vector<8x128xf32>
    %5 = vector.shape_cast %4 : vector<8x128xf32> to vector<1x8x128xf32>
    %c0_4 = arith.constant 0 : index
    %c0_5 = arith.constant 0 : index
    %c0_6 = arith.constant 0 : index
    %6 = vector.load %arg2[%c0_4, %c0_5, %c0_6] : memref<1x1x128xf32, #tpu.memory_space<vmem>>, vector<1x1x128xf32>
    %7 = vector.broadcast %6 : vector<1x1x128xf32> to vector<1x8x128xf32>
    %8 = arith.addf %5, %7 : vector<1x8x128xf32>
    %cst_7 = arith.constant 0.000000e+00 : f32
    %9 = vector.broadcast %cst_7 : f32 to vector<1x8x128xf32>
    %10 = arith.maximumf %8, %9 : vector<1x8x128xf32>
    %11 = arith.truncf %10 : vector<1x8x128xf32> to vector<1x8x128xbf16>
    %12 = vector.shape_cast %11 : vector<1x8x128xbf16> to vector<8x128xbf16>
    %c0_8 = arith.constant 0 : index
    %c0_9 = arith.constant 0 : index
    %13 = vector.load %arg4[%c0_8, %c0_9] : memref<128x128xbf16, #tpu.memory_space<vmem>>, vector<128x128xbf16>
    %cst_10 = arith.constant dense<0.000000e+00> : vector<8x128xf32>
    %14 = tpu.matmul %12, %13, %cst_10 {dimension_numbers = #tpu.dot_dimension_numbers<[1], [0], [0], [1], [0, 0, 1, 1], [], []>} : vector<8x128xbf16>, vector<128x128xbf16>, vector<8x128xf32> -> vector<8x128xf32>
    %c0_11 = arith.constant 0 : index
    %c0_12 = arith.constant 0 : index
    %15 = vector.load %arg5[%c0_11, %c0_12] : memref<1x128xf32, #tpu.memory_space<vmem>>, vector<1x128xf32>
    %16 = vector.broadcast %15 : vector<1x128xf32> to vector<8x128xf32>
    %17 = arith.addf %14, %16 : vector<8x128xf32>
    %cst_13 = arith.constant 0.000000e+00 : f32
    %18 = vector.broadcast %cst_13 : f32 to vector<8x128xf32>
    %19 = arith.maximumf %17, %18 : vector<8x128xf32>
    %20 = arith.truncf %19 : vector<8x128xf32> to vector<8x128xbf16>
    %21 = vector.shape_cast %20 : vector<8x128xbf16> to vector<1x8x128xbf16>
    %c0_14 = arith.constant 0 : index
    %c0_15 = arith.constant 0 : index
    %c0_16 = arith.constant 0 : index
    %22 = vector.load %arg6[%c0_14, %c0_15, %c0_16] : memref<1x128x128xbf16, #tpu.memory_space<vmem>>, vector<1x128x128xbf16>
    "tpu.trace_start"() <{level = 10 : i32, message = "bph,bhk->bpk"}> : () -> ()
    %cst_17 = arith.constant dense<0.000000e+00> : vector<1x8x128xf32>
    %23 = tpu.matmul %21, %22, %cst_17 {dimension_numbers = #tpu.dot_dimension_numbers<[2], [1], [1], [2], [0, 0, 0, 1, 1, 2], [0], [0]>} : vector<1x8x128xbf16>, vector<1x128x128xbf16>, vector<1x8x128xf32> -> vector<1x8x128xf32>
    "tpu.trace_stop"() : () -> ()
    %c0_18 = arith.constant 0 : index
    %c0_19 = arith.constant 0 : index
    %c0_20 = arith.constant 0 : index
    %24 = vector.load %arg7[%c0_18, %c0_19, %c0_20] : memref<1x1x128xf32, #tpu.memory_space<vmem>>, vector<1x1x128xf32>
    %25 = vector.broadcast %24 : vector<1x1x128xf32> to vector<1x8x128xf32>
    %26 = arith.addf %23, %25 : vector<1x8x128xf32>
    %c0_21 = arith.constant 0 : index
    %c0_22 = arith.constant 0 : index
    %c0_23 = arith.constant 0 : index
    %27 = vector.load %arg9[%c0_21, %c0_22, %c0_23] : memref<1x8x128xf32, #tpu.memory_space<vmem>>, vector<1x8x128xf32>
    tpu.vector_store %arg9[%c0_21, %c0_22, %c0_23], %26 {strides = array<i32>} : memref<1x8x128xf32, #tpu.memory_space<vmem>>, vector<1x8x128xf32>,
    %cst_24 = arith.constant dense<0xFF800000> : vector<1x8xf32>
    %28 = vector.multi_reduction <maximumf>, %26, %cst_24 [2] : vector<1x8x128xf32> to vector<1x8xf32>
    %29 = vector.shape_cast %28 : vector<1x8xf32> to vector<1x8x1xf32>
    %30 = vector.broadcast %29 : vector<1x8x1xf32> to vector<1x8x128xf32>
    %31 = arith.subf %26, %30 : vector<1x8x128xf32>
    %32 = math.exp %31 : vector<1x8x128xf32>
    %cst_25 = arith.constant dense<0.000000e+00> : vector<1x8xf32>
    %33 = vector.multi_reduction <add>, %32, %cst_25 [2] : vector<1x8x128xf32> to vector<1x8xf32>
    %34 = vector.shape_cast %33 : vector<1x8xf32> to vector<1x8x1xf32>
    %35 = vector.broadcast %34 : vector<1x8x1xf32> to vector<1x8x128xf32>
    %36 = arith.divf %32, %35 : vector<1x8x128xf32>
    %c0_26 = arith.constant 0 : index
    %c0_27 = arith.constant 0 : index
    %c0_28 = arith.constant 0 : index
    %37 = vector.load %arg8[%c0_26, %c0_27, %c0_28] : memref<1x128x3xf32, #tpu.memory_space<vmem>>, vector<1x128x3xf32>
    "tpu.trace_start"() <{level = 10 : i32, message = "bpk,bkd->bpd"}> : () -> ()
    %cst_29 = arith.constant dense<0.000000e+00> : vector<1x8x3xf32>
    %38 = tpu.matmul %36, %37, %cst_29 {dimension_numbers = #tpu.dot_dimension_numbers<[2], [1], [1], [2], [0, 0, 0, 1, 1, 2], [0], [0]>} : vector<1x8x128xf32>, vector<1x128x3xf32>, vector<1x8x3xf32> -> vector<1x8x3xf32>
    "tpu.trace_stop"() : () -> ()
    %c0_30 = arith.constant 0 : index
    %c0_31 = arith.constant 0 : index
    %c0_32 = arith.constant 0 : index
    %39 = vector.load %arg10[%c0_30, %c0_31, %c0_32] : memref<1x8x3xf32, #tpu.memory_space<vmem>>, vector<1x8x3xf32>
    tpu.vector_store %arg10[%c0_30, %c0_31, %c0_32], %38 {strides = array<i32>} : memref<1x8x3xf32, #tpu.memory_space<vmem>>, vector<1x8x3xf32>,
    return
  }
  func.func @transform_0(%arg0: i32) -> (i32, i32, i32) {
    %c0_i32 = arith.constant 0 : i32
    %c0_i32_0 = arith.constant 0 : i32
    %c0_i32_1 = arith.constant 0 : i32
    return %arg0, %c0_i32, %c0_i32_0 : i32, i32, i32
  }
  func.func @transform_1(%arg0: i32) -> (i32, i32, i32) {
    %c0_i32 = arith.constant 0 : i32
    %c0_i32_0 = arith.constant 0 : i32
    %c0_i32_1 = arith.constant 0 : i32
    return %arg0, %c0_i32, %c0_i32_0 : i32, i32, i32
  }
  func.func @transform_2(%arg0: i32) -> (i32, i32) {
    %c0_i32 = arith.constant 0 : i32
    %c0_i32_0 = arith.constant 0 : i32
    %c0_i32_1 = arith.constant 0 : i32
    return %c0_i32, %c0_i32_0 : i32, i32
  }
  func.func @transform_3(%arg0: i32) -> (i32, i32) {
    %c0_i32 = arith.constant 0 : i32
    %c0_i32_0 = arith.constant 0 : i32
    %c0_i32_1 = arith.constant 0 : i32
    return %c0_i32, %c0_i32_0 : i32, i32
  }
  func.func @transform_4(%arg0: i32) -> (i32, i32) {
    %c0_i32 = arith.constant 0 : i32
    %c0_i32_0 = arith.constant 0 : i32
    %c0_i32_1 = arith.constant 0 : i32
    return %c0_i32, %c0_i32_0 : i32, i32
  }
  func.func @transform_5(%arg0: i32) -> (i32, i32, i32) {
    %c0_i32 = arith.constant 0 : i32
    %c0_i32_0 = arith.constant 0 : i32
    %c0_i32_1 = arith.constant 0 : i32
    return %arg0, %c0_i32, %c0_i32_0 : i32, i32, i32
  }
  func.func @transform_6(%arg0: i32) -> (i32, i32, i32) {
    %c0_i32 = arith.constant 0 : i32
    %c0_i32_0 = arith.constant 0 : i32
    %c0_i32_1 = arith.constant 0 : i32
    return %arg0, %c0_i32, %c0_i32_0 : i32, i32, i32
  }
  func.func @transform_7(%arg0: i32) -> (i32, i32, i32) {
    %c0_i32 = arith.constant 0 : i32
    %c0_i32_0 = arith.constant 0 : i32
    %c0_i32_1 = arith.constant 0 : i32
    return %arg0, %c0_i32, %c0_i32_0 : i32, i32, i32
  }
  func.func @transform_8(%arg0: i32) -> (i32, i32, i32) {
    %c0_i32 = arith.constant 0 : i32
    %c0_i32_0 = arith.constant 0 : i32
    %c0_i32_1 = arith.constant 0 : i32
    return %arg0, %c0_i32, %c0_i32_0 : i32, i32, i32
  }
  func.func @transform_9(%arg0: i32) -> (i32, i32, i32) {
    %c0_i32 = arith.constant 0 : i32
    %c0_i32_0 = arith.constant 0 : i32
    %c0_i32_1 = arith.constant 0 : i32
    return %arg0, %c0_i32, %c0_i32_0 : i32, i32, i32
  }
}

module attributes {stable_mosaic.version = 11 : i64} {
  func.func @_face_recon_kernel(%arg0: i32, %arg1: memref<1x8x128xf32, #tpu.memory_space<vmem>>, %arg2: memref<1x8x128xf32, #tpu.memory_space<vmem>>, %arg3: memref<128x128xbf16, #tpu.memory_space<vmem>>, %arg4: memref<128x128xbf16, #tpu.memory_space<vmem>>, %arg5: memref<1x128xf32, #tpu.memory_space<vmem>>, %arg6: memref<1x8x128xf32, #tpu.memory_space<vmem>>) attributes {dimension_semantics = [#tpu.dimension_semantics<parallel>], iteration_bounds = array<i64: 2>, scalar_prefetch = 0 : i64, scratch_operands = 0 : i64, tpu.core_type = #tpu.core_type<tc>, window_params = [{transform_indices = @transform_0, window_bounds = array<i64: 1, 8, 128>}, {transform_indices = @transform_1, window_bounds = array<i64: 1, 8, 128>}, {pipeline_mode = #tpu.pipeline_mode<synchronous>, transform_indices = @transform_2, window_bounds = array<i64: 128, 128>}, {pipeline_mode = #tpu.pipeline_mode<synchronous>, transform_indices = @transform_3, window_bounds = array<i64: 128, 128>}, {pipeline_mode = #tpu.pipeline_mode<synchronous>, transform_indices = @transform_4, window_bounds = array<i64: 1, 128>}, {transform_indices = @transform_5, window_bounds = array<i64: 1, 8, 128>}]} {
    %c0 = arith.constant 0 : index
    %c0_0 = arith.constant 0 : index
    %c0_1 = arith.constant 0 : index
    %0 = vector.load %arg1[%c0, %c0_0, %c0_1] : memref<1x8x128xf32, #tpu.memory_space<vmem>>, vector<1x8x128xf32>
    %1 = vector.shape_cast %0 : vector<1x8x128xf32> to vector<8x128xf32>
    %2 = arith.truncf %1 : vector<8x128xf32> to vector<8x128xbf16>
    %c0_2 = arith.constant 0 : index
    %c0_3 = arith.constant 0 : index
    %3 = vector.load %arg3[%c0_2, %c0_3] : memref<128x128xbf16, #tpu.memory_space<vmem>>, vector<128x128xbf16>
    %cst = arith.constant dense<0.000000e+00> : vector<8x128xf32>
    %4 = tpu.matmul %2, %3, %cst {dimension_numbers = #tpu.dot_dimension_numbers<[1], [0], [0], [1], [0, 0, 1, 1], [], []>} : vector<8x128xbf16>, vector<128x128xbf16>, vector<8x128xf32> -> vector<8x128xf32>
    %c0_4 = arith.constant 0 : index
    %c0_5 = arith.constant 0 : index
    %c0_6 = arith.constant 0 : index
    %5 = vector.load %arg2[%c0_4, %c0_5, %c0_6] : memref<1x8x128xf32, #tpu.memory_space<vmem>>, vector<1x8x128xf32>
    %6 = vector.shape_cast %5 : vector<1x8x128xf32> to vector<8x128xf32>
    %7 = arith.addf %4, %6 : vector<8x128xf32>
    %cst_7 = arith.constant 0.000000e+00 : f32
    %8 = vector.broadcast %cst_7 : f32 to vector<8x128xf32>
    %9 = arith.maximumf %7, %8 : vector<8x128xf32>
    %10 = arith.truncf %9 : vector<8x128xf32> to vector<8x128xbf16>
    %c0_8 = arith.constant 0 : index
    %c0_9 = arith.constant 0 : index
    %11 = vector.load %arg4[%c0_8, %c0_9] : memref<128x128xbf16, #tpu.memory_space<vmem>>, vector<128x128xbf16>
    %cst_10 = arith.constant dense<0.000000e+00> : vector<8x128xf32>
    %12 = tpu.matmul %10, %11, %cst_10 {dimension_numbers = #tpu.dot_dimension_numbers<[1], [0], [0], [1], [0, 0, 1, 1], [], []>} : vector<8x128xbf16>, vector<128x128xbf16>, vector<8x128xf32> -> vector<8x128xf32>
    %c0_11 = arith.constant 0 : index
    %c0_12 = arith.constant 0 : index
    %13 = vector.load %arg5[%c0_11, %c0_12] : memref<1x128xf32, #tpu.memory_space<vmem>>, vector<1x128xf32>
    %14 = vector.broadcast %13 : vector<1x128xf32> to vector<8x128xf32>
    %15 = arith.addf %12, %14 : vector<8x128xf32>
    %16 = vector.shape_cast %15 : vector<8x128xf32> to vector<1x8x128xf32>
    %c0_13 = arith.constant 0 : index
    %c0_14 = arith.constant 0 : index
    %c0_15 = arith.constant 0 : index
    %17 = vector.load %arg6[%c0_13, %c0_14, %c0_15] : memref<1x8x128xf32, #tpu.memory_space<vmem>>, vector<1x8x128xf32>
    tpu.vector_store %arg6[%c0_13, %c0_14, %c0_15], %16 {strides = array<i32>} : memref<1x8x128xf32, #tpu.memory_space<vmem>>, vector<1x8x128xf32>,
    return
  }
  func.func @transform_0(%arg0: i32) -> (i32, i32, i32) {
    %c0_i32 = arith.constant 0 : i32
    %c0_i32_0 = arith.constant 0 : i32
    %c0_i32_1 = arith.constant 0 : i32
    return %arg0, %c0_i32, %c0_i32_0 : i32, i32, i32
  }
  func.func @transform_1(%arg0: i32) -> (i32, i32, i32) {
    %c0_i32 = arith.constant 0 : i32
    %c0_i32_0 = arith.constant 0 : i32
    %c0_i32_1 = arith.constant 0 : i32
    return %arg0, %c0_i32, %c0_i32_0 : i32, i32, i32
  }
  func.func @transform_2(%arg0: i32) -> (i32, i32) {
    %c0_i32 = arith.constant 0 : i32
    %c0_i32_0 = arith.constant 0 : i32
    %c0_i32_1 = arith.constant 0 : i32
    return %c0_i32, %c0_i32_0 : i32, i32
  }
  func.func @transform_3(%arg0: i32) -> (i32, i32) {
    %c0_i32 = arith.constant 0 : i32
    %c0_i32_0 = arith.constant 0 : i32
    %c0_i32_1 = arith.constant 0 : i32
    return %c0_i32, %c0_i32_0 : i32, i32
  }
  func.func @transform_4(%arg0: i32) -> (i32, i32) {
    %c0_i32 = arith.constant 0 : i32
    %c0_i32_0 = arith.constant 0 : i32
    %c0_i32_1 = arith.constant 0 : i32
    return %c0_i32, %c0_i32_0 : i32, i32
  }
  func.func @transform_5(%arg0: i32) -> (i32, i32, i32) {
    %c0_i32 = arith.constant 0 : i32
    %c0_i32_0 = arith.constant 0 : i32
    %c0_i32_1 = arith.constant 0 : i32
    return %arg0, %c0_i32, %c0_i32_0 : i32, i32, i32
  }
}

</mosaic_0001>

<bundles_post_ra>
// kernel: spd_bbox_normal_net.6
= control target key start
LH: loop header
LB: loop body
LE: loop exit
PB: predicated region body
PF: predicated region fallthrough
CT: control target
= control target key end

     0   :  { %s1610_s0 = inlined_call_operand.vmem [shape: f32[2,8,128], index: 0, kind: input, shape index: {}]   ;;  %s1611_s1 = inlined_call_operand.vmem [shape: f32[2,1,128], index: 1, kind: input, shape index: {}]   ;;  %s1612_s2 = inlined_call_operand.vmem [shape: bf16[128,128], index: 2, kind: input, shape index: {}]   ;;  %s1613_s3 = inlined_call_operand.vmem [shape: bf16[128,128], index: 3, kind: input, shape index: {}]   ;;  %s1614_s4 = inlined_call_operand.vmem [shape: f32[1,128], index: 4, kind: input, shape index: {}]   ;;  %s1615_s5 = inlined_call_operand.vmem [shape: bf16[2,128,128], index: 5, kind: input, shape index: {}]   ;;  %s1616_s6 = inlined_call_operand.vmem [shape: f32[2,1,128], index: 6, kind: input, shape index: {}]   ;;  %s1617_s7 = inlined_call_operand.vmem [shape: f32[2,128,3], index: 7, kind: input, shape index: {}]   ;;  %s1618_s8 = inlined_call_operand.hbm [shape: f32[2,8,128], index: 8, kind: output, shape index: {0}]   ;;  %s1619_s9 = inlined_call_operand.vmem [shape: f32[2,8,3], index: 9, kind: output, shape index: {1}]  }
   0x1   :  { %1621 = sst [smem:[#allocation5_spill]] %s1610_s0 }
   0x2   :  { %1622 = sst [smem:[#allocation6_spill]] %s1611_s1 }
   0x3   :  { %15 = vsyncpa [#allocation3], 0 }
   0x4   :  { %17 = vsyncpa [#allocation3 + $0x1], 0  ;;  %s1359_s30 = smov 0   ;;  %s1361_s10 = smov 0  }
   0x5   :  { %s1363_s11 = smov 0   ;;  %s1365_s12 = smov 0  }
   0x6 LB: > { %s1380_s13 = sadd.s32 4294967295, %s1304_s12   ;;  %s992_s14 = sadd.s32 4294967294, %s1304_s12   ;;  %s1304_s12 = sphi %s1365_s12, %s1631_s12   ;;  %s1300_s11 = sphi %s1363_s11, %s1630_s11   ;;  %s1296_s10 = sphi %s1361_s10, %s1629_s10   ;;  %s1292_s30 = sphi %s1359_s30, %s1628_s30  }
   0x7   : > { %s1384_s15 = sadd.s32 1, %s1304_s12   ;;  %s223_s16 = sadd.s32 1, %s1300_s11 }
   0x8   : > { %s220_s17 = ssub.s32 %s1304_s12, %s1384_s15  ;;  %p233_p0 = scmp.ne.s32.totalorder %s1300_s11, %s1296_s10 }
   0x9   : > { %p221_p1 = scmp.eq.s32.totalorder %s220_s17, 0  ;;  %p234_p2 = scmp.eq.s32.totalorder %s1380_s13, 1 }
   0xa   : > { %p239_p3 = scmp.ne.s32.totalorder %s1296_s10, %s1292_s30  ;;  %p240_p4 = scmp.eq.s32.totalorder %s992_s14, 1 }
   0xb   : > { %s1395_s18 = scalar_select %p221_p1, %s1300_s11, %s223_s16  }
   0xc   : > { %p1397_p5 = por %p234_p2, %p233_p0  ;;  %p1401_p6 = por %p240_p4, %p239_p3 }
   0xd   : > { %p995_p7 = scmp.ge.s32.totalorder %s1304_s12, 1  ;;  %p328_p8 = scmp.lt.s32.totalorder %s1304_s12, 3 }
   0xf   : > { %p329_p9 = pnand %p995_p7, %p328_p8 }
  0x10   : > { %p383_p10 = scmp.lt.s32.totalorder (!%p329_p9), %s1380_s13, 1  ;;  %s1625_s0 = sld [smem:[#allocation5_spill]] (!%p329_p9) }
  0x11   : > { %332 = sbr.rel (%p329_p9) target bundleno = 1153 (0x481), region = 52  ;;  %s1626_s1 = sld [smem:[#allocation6_spill]] (!%p329_p9) }
  0x12   : > { %s374_s28 = sand.u32 (!%p329_p9), 1, %s1296_s10   ;;  %s1031_s14 = sshll.u32 (!%p329_p9), %s1380_s13, 7 }
  0x16   : > { %v1216_v0 = vld [vmem:[%s1612_s2 + $0x38] sm:$0xff]   ;;  %v1306_v1 = vmov 0.0   ;;  %v1217_v2 = vld [vmem:[%s1612_s2 + $0x30] sm:$0xff]   ;;  %vm1307_vm0 = vmmov 0   ;;  %v1218_v3 = vld [vmem:[%s1612_s2 + $0x28] sm:$0xff]   ;;  %s1426_s27 = scalar_select %p383_p10, %s1380_s13, 1 }
  0x17   : > { %1080 = vmatprep.subr.bf16.mxu0 %v1306_v1  ;;  %1100 = vmatprep.subr.bf16.mxu1 %v1306_v1  ;;  %v1224_v4 = vld [vmem:[%s1613_s3 + $0x38] sm:$0xff]   ;;  %v1219_v5 = vld [vmem:[%s1612_s2 + $0x20] sm:$0xff]   ;;  %v1225_v6 = vld [vmem:[%s1613_s3 + $0x30] sm:$0xff]  }
  0x18   : > { %1081 = vmatpush3.bf16.msra.mxu0 %v1216_v0  ;;  %1096 = vmatprep.mubr.msk.bf16.mxu0 %vm1307_vm0, %v1306_v1  ;;  %s1034_s17 = sshll.u32 %s1426_s27, 6  ;;  %v1220_v7 = vld [vmem:[%s1612_s2 + $0x18] sm:$0xff]   ;;  %s1620_s25 = sshll.u32 %s1426_s27, 3  ;;  %v1226_v8 = vld [vmem:[%s1613_s3 + $0x28] sm:$0xff]   ;;  %v1221_v9 = vld [vmem:[%s1612_s2 + $0x10] sm:$0xff]  }
  0x19   : > { %1082 = vmatprep.subr.bf16.mxu0 %v1306_v1  ;;  %1116 = vmatprep.mubr.msk.bf16.mxu1 %vm1307_vm0, %v1306_v1  ;;  %s1447_s29 = scalar_lea.vmem %s1615_s5, %s1034_s17  ;;  %v1227_v10 = vld [vmem:[%s1613_s3 + $0x20] sm:$0xff]   ;;  %v1222_v11 = vld [vmem:[%s1612_s2 + $0x8] sm:$0xff]   ;;  %s386_s16 = scalar_lea.vmem %s1625_s0, %s1620_s25  ;;  %v1228_v12 = vld [vmem:[%s1613_s3 + $0x18] sm:$0xff]  }
  0x1a   : > { %1101 = vmatpush3.bf16.msra.mxu1 %v1224_v4  ;;  %v1223_v13 = vld [vmem:[%s1612_s2] sm:$0xff]   ;;  %v1229_v15 = vld [vmem:[%s1613_s3 + $0x10] sm:$0xff]   ;;  %v1230_v17 = vld [vmem:[%s1613_s3 + $0x8] sm:$0xff]   ;;  %s389_s24 = scalar_lea.vmem %s1626_s1, %s1426_s27  ;;  %s397_s21 = scalar_lea.vmem %s1616_s6, %s1426_s27 }
  0x1b   : > { %1102 = vmatprep.subr.bf16.mxu1 %v1306_v1  ;;  %v408_v14 = vld [vmem:[%s386_s16] sm:$0xff]  ;;  %v1232_v19 = vld [vmem:[%s1447_s29 + $0x38] sm:$0xff]   ;;  %v1233_v20 = vld [vmem:[%s1447_s29 + $0x30] sm:$0xff]   ;;  %s1035_s23 = sshll.u32 %s1426_s27, 7  ;;  %s847_s17 = scalar_lea.sflag [#allocation3], %s374_s28 }
  0x1c   : > { %1083 = vmatpush3.bf16.msra.mxu0 %v1217_v2  ;;  %v409_v16 = vpack.c.bf16 %v408_v14, %v408_v14  ;;  %v1231_v18 = vld [vmem:[%s1613_s3] sm:$0xff]   ;;  %v1234_v21 = vld [vmem:[%s1447_s29 + $0x28] sm:$0xff]   ;;  %v1236_v23 = vld [vmem:[%s1447_s29 + $0x18] sm:$0xff]   ;;  %s1535_s26 = scalar_lea.vmem %s1617_s7, %s1035_s23  ;;  %s1308_s25 = smov [#allocation2]  }
  0x1d   : > { %1084 = vmatprep.subr.bf16.mxu0 %v1306_v1  ;;  %v1235_v22 = vld [vmem:[%s1447_s29 + $0x20] sm:$0xff]   ;;  %v1237_v24 = vld [vmem:[%s1447_s29 + $0x10] sm:$0xff]   ;;  %v1238_v33 = vld [vmem:[%s1447_s29 + $0x8] sm:$0xff]   ;;  %s1248_s0 = sshll.u32 %s1308_s25, 4  ;;  %s1249_s0 = int_to_ptr.vmem [resolvable:$false] %s1248_s0 }
  0x1e   : > { %1103 = vmatpush3.bf16.msra.mxu1 %v1225_v6  ;;  %v1011_v25 = vld [vmem:[%s389_s24] ss:$0 sm:$0xff]  ;;  %v773_v49 = vld [vmem:[%s1535_s26 + $0x78] sm:$0xff]  ;;  %v772_v50 = vld [vmem:[%s1535_s26 + $0x70] sm:$0xff]  ;;  %s862_s24 = scalar_lea.hbm %s1618_s8, %s1031_s14  ;;  %s1250_s1 = scalar_lea.vmem %s1249_s0, 256 }
  0x1f   : > { %1104 = vmatprep.subr.bf16.mxu1 %v1306_v1  ;;  %v1239_v34 = vld [vmem:[%s1447_s29] sm:$0xff]   ;;  %s1526_s29 = sshll.u32 %s374_s28, 3  ;;  %v771_v51 = vld [vmem:[%s1535_s26 + $0x68] sm:$0xff]  ;;  %v769_v53 = vld [vmem:[%s1535_s26 + $0x58] sm:$0xff] }
  0x20   : > { %1085 = vmatpush3.bf16.msra.mxu0 %v1218_v3  ;;  %v1012_v35 = vld [vmem:[%s1614_s4] ss:$0 sm:$0xff]  ;;  %s376_s22 = scalar_lea.vmem [#allocation2], %s1526_s29  ;;  %v768_v54 = vld [vmem:[%s1535_s26 + $0x50] sm:$0xff]  ;;  %v767_v55 = vld [vmem:[%s1535_s26 + $0x48] sm:$0xff] }
  0x21   : > { %1086 = vmatprep.subr.bf16.mxu0 %v1306_v1  ;;  %v1021_v43 = vld [vmem:[%s397_s21] ss:$0 sm:$0xff]  ;;  %v765_v61 = vld [vmem:[%s1535_s26 + $0x38] sm:$0xff]  ;;  %v764_v62 = vld [vmem:[%s1535_s26 + $0x30] sm:$0xff]  ;;  %s864_s16 = sshll.u32 %s376_s22, 4  ;;  %s865_s16 = int_to_ptr.vmem [resolvable:$true] %s864_s16 }
  0x22   : > { %1105 = vmatpush3.bf16.msra.mxu1 %v1226_v8  ;;  %v770_v52 = vld [vmem:[%s1535_s26 + $0x60] sm:$0xff]  ;;  %v763_v63 = vld [vmem:[%s1535_s26 + $0x28] sm:$0xff]  ;;  %v761_v2 = vld [vmem:[%s1535_s26 + $0x18] sm:$0xff]  ;;  %p1251_p0 = scmp.lt.s32.totalorder %s865_s16, %s1249_s0 }
  0x23   : > { %1106 = vmatprep.subr.bf16.mxu1 %v1306_v1  ;;  %v766_v56 = vld [vmem:[%s1535_s26 + $0x40] sm:$0xff]  ;;  %v760_v3 = vld [vmem:[%s1535_s26 + $0x10] sm:$0xff]  ;;  %v759_v4 = vld [vmem:[%s1535_s26 + $0x8] sm:$0xff] }
  0x24   : > { %1087 = vmatpush3.bf16.msra.mxu0 %v1219_v5  ;;  %v762_v0 = vld [vmem:[%s1535_s26 + $0x20] sm:$0xff] }
  0x25   : > { %1088 = vmatprep.subr.bf16.mxu0 %v1306_v1  ;;  %v758_v5 = vld [vmem:[%s1535_s26] sm:$0xff]  ;;  %s1244_s26 = scalar_lea.vmem %s865_s16, 128 }
  0x26   : > { %1107 = vmatpush3.bf16.msra.mxu1 %v1227_v10  ;;  %p1245_p11 = scmp.ne.s32.totalorder %s865_s16, %s1244_s26  ;;  %p1252_p1 = scmp.lt.s32.totalorder %s1250_s1, %s1244_s26 }
  0x27   : > { %1108 = vmatprep.subr.bf16.mxu1 %v1306_v1 }
  0x28   : > { %1089 = vmatpush3.bf16.msra.mxu0 %v1220_v7  ;;  %p1246_p12 = pnand %p1245_p11, %p1397_p5  ;;  %p1253_p2 = por %p1252_p1, %p1251_p0 }
  0x29   : > { %1090 = vmatprep.subr.bf16.mxu0 %v1306_v1 }
  0x2a   : > { %1109 = vmatpush3.bf16.msra.mxu1 %v1228_v12  ;;  %p1247_p13 = pneg %p1246_p12 }
  0x2b   : > { %1110 = vmatprep.subr.bf16.mxu1 %v1306_v1 }
  0x2c   : > { %1091 = vmatpush3.bf16.msra.mxu0 %v1221_v9  ;;  %p1254_p3 = pnand %p1253_p2, %p1247_p13 }
  0x2d   : > { %1092 = vmatprep.subr.bf16.mxu0 %v1306_v1 }
  0x2e   : > { %1111 = vmatpush3.bf16.msra.mxu1 %v1229_v15 }
  0x2f   : > { %1112 = vmatprep.subr.bf16.mxu1 %v1306_v1 }
  0x30   : > { %1093 = vmatpush3.bf16.msra.mxu0 %v1222_v11 }
  0x31   : > { %1094 = vmatprep.subr.bf16.mxu0 %v1306_v1 }
  0x32   : > { %1113 = vmatpush3.bf16.msra.mxu1 %v1230_v17 }
  0x33   : > { %1114 = vmatprep.subr.bf16.mxu1 %v1306_v1 }
  0x34   : > { %1095 = vmatpush3.bf16.msra.mxu0 %v1223_v13 }
  0x35   : > { %1120 = vmatprep.subr.bf16.mxu0 %v1306_v1 }
  0x36   : > { %1115 = vmatpush3.bf16.msra.mxu1 %v1231_v18 }
  0x37   : > { %1097 = vmatmul.mubr.bf16.vlgmr.msra.gmra.mxu0 %v409_v16  ;;  %1140 = vmatprep.subr.mxu1 %v1306_v1 }
  0x38   : > { %1136 = vmatprep.mubr.msk.bf16.mxu0 %vm1307_vm0, %v1306_v1  ;;  %1121 = vmatpush3.bf16.msra.mxu0 %v1232_v19 }
  0x39   : > { %1122 = vmatprep.subr.bf16.mxu0 %v1306_v1 }
  0x3c   : > { %1123 = vmatpush3.bf16.msra.mxu0 %v1233_v20 }
  0x3d   : > { %1124 = vmatprep.subr.bf16.mxu0 %v1306_v1 }
  0x40   : > { %1125 = vmatpush3.bf16.msra.mxu0 %v1234_v21 }
  0x41   : > { %1126 = vmatprep.subr.bf16.mxu0 %v1306_v1 }
  0x44   : > { %1127 = vmatpush3.bf16.msra.mxu0 %v1235_v22 }
  0x45   : > { %1128 = vmatprep.subr.bf16.mxu0 %v1306_v1 }
  0x48   : > { %1129 = vmatpush3.bf16.msra.mxu0 %v1236_v23 }
  0x49   : > { %1130 = vmatprep.subr.bf16.mxu0 %v1306_v1 }
  0x4c   : > { %1131 = vmatpush3.bf16.msra.mxu0 %v1237_v24 }
  0x4d   : > { %1132 = vmatprep.subr.bf16.mxu0 %v1306_v1 }
  0x50   : > { %1133 = vmatpush3.bf16.msra.mxu0 %v1238_v33 }
  0x51   : > { %1134 = vmatprep.subr.bf16.mxu0 %v1306_v1 }
  0x54   : > { %1135 = vmatpush3.bf16.msra.mxu0 %v1239_v34 }
  0xf7   : > { %v508_v26 = vpop.f32.mrf.mxu0 }
  0xf8   : > { %v521_v27 = vadd.f32 %v1011_v25, %v508_v26 }
  0xf9   : > { %v1098_v28 = vpop.f32.mrf.mxu0 }
  0xfa   : > { %v522_v29 = vmax.f32 %v521_v27, 0.0 }
  0xfb   : > { %v511_v30 = vpop.f32.mrf.mxu0 }
  0xfc   : > { %v523_v31 = vpack.c.bf16 %v522_v29, %v522_v29 }
  0xfd   : > { %v1099_v32 = vpop.f32.mrf.mxu0 }
  0xfe   : > { %1117 = vmatmul.mubr.bf16.vlgmr.msra.gmra.mxu1 %v523_v31 }
  0xff   : > { %1172 = vmatprep.mubr.msk.f32.mxu1 %vm1307_vm0, %v1306_v1  ;;  %1141 = vmatpush3.msra.mxu1 %v773_v49 }
 0x100   : > { %1142 = vmatprep.subr.mxu1 %v1306_v1 }
 0x101   : > { %1143 = vmatpush3.msra.mxu1 %v772_v50 }
 0x102   : > { %1144 = vmatprep.subr.mxu1 %v1306_v1 }
 0x103   : > { %1145 = vmatpush3.msra.mxu1 %v771_v51 }
 0x104   : > { %1146 = vmatprep.subr.mxu1 %v1306_v1 }
 0x105   : > { %1147 = vmatpush3.msra.mxu1 %v770_v52 }
 0x106   : > { %1148 = vmatprep.subr.mxu1 %v1306_v1 }
 0x107   : > { %1149 = vmatpush3.msra.mxu1 %v769_v53 }
 0x108   : > { %1150 = vmatprep.subr.mxu1 %v1306_v1 }
 0x109   : > { %1151 = vmatpush3.msra.mxu1 %v768_v54 }
 0x10a   : > { %1152 = vmatprep.subr.mxu1 %v1306_v1 }
 0x10b   : > { %1153 = vmatpush3.msra.mxu1 %v767_v55 }
 0x10c   : > { %1154 = vmatprep.subr.mxu1 %v1306_v1 }
 0x10d   : > { %1155 = vmatpush3.msra.mxu1 %v766_v56 }
 0x10e   : > { %1156 = vmatprep.subr.mxu1 %v1306_v1 }
 0x10f   : > { %1157 = vmatpush3.msra.mxu1 %v765_v61 }
 0x110   : > { %1158 = vmatprep.subr.mxu1 %v1306_v1 }
 0x111   : > { %1159 = vmatpush3.msra.mxu1 %v764_v62 }
 0x112   : > { %1160 = vmatprep.subr.mxu1 %v1306_v1 }
 0x113   : > { %1161 = vmatpush3.msra.mxu1 %v763_v63 }
 0x114   : > { %1162 = vmatprep.subr.mxu1 %v1306_v1 }
 0x115   : > { %1163 = vmatpush3.msra.mxu1 %v762_v0 }
 0x116   : > { %1164 = vmatprep.subr.mxu1 %v1306_v1 }
 0x117   : > { %1165 = vmatpush3.msra.mxu1 %v761_v2 }
 0x118   : > { %1166 = vmatprep.subr.mxu1 %v1306_v1 }
 0x119   : > { %1167 = vmatpush3.msra.mxu1 %v760_v3 }
 0x11a   : > { %1168 = vmatprep.subr.mxu1 %v1306_v1 }
 0x11b   : > { %1169 = vmatpush3.msra.mxu1 %v759_v4 }
 0x11c   : > { %1170 = vmatprep.subr.mxu1 %v1306_v1 }
 0x11d   : > { %1171 = vmatpush3.msra.mxu1 %v758_v5 }
 0x1be   : > { %v629_v36 = vpop.f32.mrf.mxu1 }
 0x1bf   : > { %v630_v37 = vadd.f32 %v1012_v35, %v629_v36 }
 0x1c0   : > { %v1118_v38 = vpop.f32.mrf.mxu1 }
 0x1c1   : > { %v635_v39 = vmax.f32 %v630_v37, 0.0 }
 0x1c2   : > { %v632_v40 = vpop.f32.mrf.mxu1 }
 0x1c3   : > { %v636_v41 = vpack.c.bf16 %v635_v39, %v635_v39 }
 0x1c4   : > { %v1119_v42 = vpop.f32.mrf.mxu1 }
 0x1c5   : > { %1137 = vmatmul.mubr.bf16.vlgmr.msra.gmra.mxu0 %v636_v41 }
 0x285   : > { %v742_v44 = vpop.f32.mrf.mxu0 }
 0x286   : > { %v743_v45 = vadd.f32 %v1021_v43, %v742_v44 }
 0x287   : > { %v1138_v46 = vpop.f32.mrf.mxu0 }
 0x288   : > { %749 = vmax.xlane.f32.xlu0 %v743_v45  ;;  %748 = vst [vmem:[%s376_s22] sm:$0xff] %v743_v45 }
 0x289   : > { %v745_v47 = vpop.f32.mrf.mxu0 }
 0x28b   : > { %v1139_v48 = vpop.f32.mrf.mxu0 }
 0x311   : > { %v750_v57 = vpop.xlane.xlu0 %749 }
 0x312   : > { %v751_v58 = vsub.f32 %v743_v45, %v750_v57 }
 0x314   : > { %v752_v59 = vmul.f32 1.442695, %v751_v58 }
 0x316   : > { %1240 = vpow2.f32 %v752_v59 }
 0x323   : > { %v1241_v60 = vpop.eup %1240 }
 0x324   : > { %754 = vadd.xlane.f32.xlu0 %v1241_v60 }
 0x3ad   : > { %v755_v6 = vpop.xlane.xlu0 %754 }
 0x3ae   : > { %1242 = vrcp.f32 %v755_v6 }
 0x3bb   : > { %v1243_v7 = vpop.eup %1242 }
 0x3bc   : > { %v757_v8 = vmul.f32 %v1243_v7, %v1241_v60 }
 0x3be   : > { %1173 = vmatmul.mubr.f32.vlgmr.msra.gmra.mxu1 %v757_v8 }
 0x3bf   : > { %1257 = shalt.err (!%p1254_p3)
}
 0x3c0   : > { %s1258_s13 = scalar_lea.hbm %s862_s24, 128  ;;  %s1262_s22 = scalar_lea.hbm %s1618_s8, 256 }
 0x3c1   : > { %p1259_p4 = scmp.ne.s32.totalorder %s862_s24, %s1258_s13  ;;  %p1263_p9 = scmp.lt.s32.totalorder %s862_s24, %s1618_s8 }
 0x3c2   : > { %p1264_p10 = scmp.lt.s32.totalorder %s1262_s22, %s1258_s13 }
 0x3c3   : > { %p1260_p7 = pnand %p1259_p4, %p1397_p5 }
 0x3c4   : > { %p1265_p11 = por %p1264_p10, %p1263_p9 }
 0x3c5   : > { %p1261_p8 = pneg %p1260_p7 }
 0x3c7   : > { %p1266_p12 = pnand %p1265_p11, %p1261_p8 }
 0x3c9   : > { %1269 = shalt.err (!%p1266_p12)
}
 0x3ca   : > { %1175 = dma.vmem_to_hbm [thread:$0]  (%p1397_p5), %s865_s16, 128, %s862_s24, %s847_s17   ;;  %vm844_vm1 = vcmask 23552  }
 0x3cb   : > { %s1627_s0 = sshll.u32 %s1426_s27, 3 }
 0x3cc   : > { %s406_s23 = scalar_lea.vmem %s1619_s9, %s1627_s0 }
 0x47e   : > { %v840_v1 = vpop.f32.mrf.mxu1 }
 0x47f   : > { %845 = vst.msk [vmem:[%s406_s23] sm:$0xff] %vm844_vm1, %v840_v1 }
 0x480   : > { %v1174_v9 = vpop.f32.mrf.mxu1 }
 0x481 PF: > { %p1181_p13 = scmp.ge.s32.totalorder %s1304_s12, 2  ;;  %s879_s26 = sand.u32 1, %s1292_s30  }
 0x482   : > { %s880_s19 = scalar_lea.sflag [#allocation3], %s879_s26 }
 0x483   : > { %p1178_p0 = pnand %p1181_p13, %p1401_p6 }
 0x485   : > { %p1179_p1 = pneg %p1178_p0 }
 0x487   : > { %1287 = dma.done.wait (%p1179_p1), %s880_s19, 128  }
 0x488   : > { %1289 = vsyncadd (%p1179_p1), %s880_s19, 4294967168  ;;  %p20_p5 = scmp.ge.s32.totalorder %s1384_s15, 4   ;;  %s1628_s30 = smov %s1296_s10 }
 0x489   : > { %s1629_s10 = smov %s1300_s11  ;;  %s1630_s11 = smov %s1395_s18 }
 0x48a   : > { %s1631_s12 = smov %s1384_s15  ;;  %22 = sbr.rel (!%p20_p5) target bundleno = 6 (0x6), region = 111 }
 0x48f   :  { %892 = vsyncpa [#allocation3], 1 }
 0x490   :  { %894 = vsyncpa [#allocation3 + $0x1], 1 }

// kernel: spd_bbox_normal_net.5
= control target key start
LH: loop header
LB: loop body
LE: loop exit
PB: predicated region body
PF: predicated region fallthrough
CT: control target
= control target key end

     0   :  { %s1679_s0 = inlined_call_operand.vmem [shape: s32[2], index: 0, kind: input, shape index: {}]   ;;  %s1680_s1 = inlined_call_operand.vmem [shape: bf16[2,128,128], index: 1, kind: input, shape index: {}]   ;;  %s1681_s2 = inlined_call_operand.vmem [shape: f32[2,8,128], index: 2, kind: input, shape index: {}]   ;;  %s1682_s3 = inlined_call_operand.vmem [shape: bf16[128,128], index: 3, kind: input, shape index: {}]   ;;  %s1683_s4 = inlined_call_operand.vmem [shape: bf16[128,128], index: 4, kind: input, shape index: {}]   ;;  %s1684_s5 = inlined_call_operand.vmem [shape: f32[1,128], index: 5, kind: input, shape index: {}]   ;;  %s1685_s6 = inlined_call_operand.vmem [shape: bf16[6,128,3], index: 6, kind: input, shape index: {}]   ;;  %s1686_s7 = inlined_call_operand.vmem [shape: f32[6,1,3], index: 7, kind: input, shape index: {}]   ;;  %s1687_s8 = inlined_call_operand.vmem [shape: f32[2,128,3], index: 8, kind: output, shape index: {}]  }
   0x1   :  { %s13_s29 = sshll.u32 %s1679_s0, 4  ;;  %s14_s29 = int_to_ptr.vmem [resolvable:$true] %s13_s29 }
   0x2   :  { %s1422_s30 = scalar_lea.vmem %s14_s29, 16  ;;  %p1427_p1 = scmp.lt.s32.totalorder %s14_s29, %s14_s29 }
   0x3   :  { %p1423_p0 = scmp.ne.s32.totalorder %s14_s29, %s1422_s30  ;;  %p1428_p2 = scmp.lt.s32.totalorder %s1422_s30, %s1422_s30 }
   0x5   :  { %p1429_p3 = por %p1428_p2, %p1427_p1 }
   0x7   :  { %p1430_p4 = pnand %p1429_p3, %p1423_p0 }
   0x9   :  { %1433 = shalt.err (!%p1430_p4)  }
   0xa   :  { %s1460_s9 = smov [#allocation3]  }
   0xb   :  { %16 = dma.vmem_to_smem %s14_s29, 16, %s1460_s9, [#allocation2] }
   0xc   :  { %1446 = dma.done.wait [#allocation2], 16 }
   0xd   :  { %1447 = vsyncadd [#allocation2], 4294967280 }
   0xe   :  { %18 = sfence }
   0xf   :  { %s1509_s10 = smov 0   ;;  %s1511_s11 = smov 0  }
  0x10   :  { %s1513_s12 = smov 0  }
  0x11 LB: > { %s36_s0 = sadd.s32 1, %s1454_s11  ;;  %p1158_p5 = scmp.ge.s32.totalorder %s1458_s12, 1  ;;  %s1458_s12 = sphi %s1513_s12, %s24_s12   ;;  %s1454_s11 = sphi %s1511_s11, %s1689_s11   ;;  %s1450_s10 = sphi %s1509_s10, %s1688_s10  }
  0x12   : > { %p38_p6 = scmp.ge.s32.totalorder %s36_s0, 2  ;;  %p300_p7 = scmp.lt.s32.totalorder %s1458_s12, 3 }
  0x14   : > { %s1691_s0 = smov (%p38_p6, %s36_s0), 0  ;;  %p301_p8 = pnand %p1158_p5, %p300_p7 }
  0x15   : > { %p355_p9 = scmp.lt.s32.totalorder (!%p301_p8), %s1450_s10, 1  ;;  %s375_s26 = sld [smem:[#allocation3 + %s1450_s10]] (!%p301_p8) }
  0x16   : > { %304 = sbr.rel (%p301_p8) target bundleno = 698 (0x2ba), region = 48 }
  0x1b   : > { %v1390_v0 = vld [vmem:[%s1682_s3 + $0x38] sm:$0xff]   ;;  %v1391_v1 = vld [vmem:[%s1682_s3 + $0x30] sm:$0xff]   ;;  %s1537_s17 = scalar_select %p355_p9, %s1450_s10, 1  ;;  %v1392_v2 = vld [vmem:[%s1682_s3 + $0x28] sm:$0xff]   ;;  %vm1017_vm0 = vcmask 23552  }
  0x1c   : > { %1253 = vmatprep.subr.bf16.mxu0 %v1390_v0  ;;  %v1393_v3 = vld [vmem:[%s1682_s3 + $0x20] sm:$0xff]   ;;  %v1394_v5 = vld [vmem:[%s1682_s3 + $0x18] sm:$0xff]   ;;  %v1395_v6 = vld [vmem:[%s1682_s3 + $0x10] sm:$0xff]   ;;  %p376_p11 = scmp.lt.s32.totalorder %s375_s26, 5 }
  0x1d   : > { %1254 = vmatpush3.bf16.msra.mxu0 %v1390_v0  ;;  %s1202_s20 = sshll.u32 %s1537_s17, 6  ;;  %v1406_v7 = vld [vmem:[%s1683_s4 + $0x38] sm:$0xff]   ;;  %v1407_v8 = vld [vmem:[%s1683_s4 + $0x30] sm:$0xff]   ;;  %v1396_v9 = vld [vmem:[%s1682_s3 + $0x8] sm:$0xff]   ;;  %s1161_s19 = sshll.u32 %s1537_s17, 3 }
  0x1e   : > { %1255 = vmatprep.subr.bf16.mxu0 %v1391_v1  ;;  %s1546_s23 = scalar_lea.vmem %s1680_s1, %s1202_s20  ;;  %1285 = vmatprep.subr.bf16.mxu1 %v1406_v7  ;;  %v1408_v10 = vld [vmem:[%s1683_s4 + $0x28] sm:$0xff]   ;;  %v1397_v11 = vld [vmem:[%s1682_s3] sm:$0xff]   ;;  %v1410_v13 = vld [vmem:[%s1683_s4 + $0x18] sm:$0xff]   ;;  %s367_s22 = scalar_lea.vmem %s1681_s2, %s1161_s19 }
  0x1f   : > { %v1398_v4 = vld [vmem:[%s1546_s23] sm:$0xff]   ;;  %1286 = vmatpush3.bf16.msra.mxu1 %v1406_v7  ;;  %v1399_v14 = vld [vmem:[%s1546_s23 + $0x8] sm:$0xff]   ;;  %v1400_v15 = vld [vmem:[%s1546_s23 + $0x10] sm:$0xff]   ;;  %s1695_s26 = smov (!%p376_p11, %s375_s26), 5  ;;  %s1204_s30 = sshll.u32 %s1537_s17, 7 }
  0x20   : > { %1269 = vmatprep.mubr.bf16.mxu0 %v1398_v4  ;;  %1287 = vmatprep.subr.bf16.mxu1 %v1407_v8  ;;  %v1409_v12 = vld [vmem:[%s1683_s4 + $0x20] sm:$0xff]   ;;  %v1401_v16 = vld [vmem:[%s1546_s23 + $0x18] sm:$0xff]   ;;  %v1403_v18 = vld [vmem:[%s1546_s23 + $0x28] sm:$0xff]   ;;  %s378_s29 = scalar_lea.vmem %s1686_s7, %s1695_s26 }
  0x21   : > { %1256 = vmatpush3.bf16.msra.mxu0 %v1391_v1  ;;  %v1402_v17 = vld [vmem:[%s1546_s23 + $0x20] sm:$0xff]   ;;  %v1404_v19 = vld [vmem:[%s1546_s23 + $0x30] sm:$0xff]   ;;  %v1405_v20 = vld [vmem:[%s1546_s23 + $0x38] sm:$0xff]   ;;  %s368_s23 = sld [smem:[#allocation3 + %s1450_s10]] }
  0x22   : > { %1257 = vmatprep.subr.bf16.mxu0 %v1392_v2  ;;  %v1411_v21 = vld [vmem:[%s1683_s4 + $0x10] sm:$0xff]   ;;  %v1412_v22 = vld [vmem:[%s1683_s4 + $0x8] sm:$0xff]   ;;  %v1413_v23 = vld [vmem:[%s1683_s4] sm:$0xff]  }
  0x23   : > { %1288 = vmatpush3.bf16.msra.mxu1 %v1407_v8  ;;  %v616_v31 = vld [vmem:[%s367_s22] sm:$0xff] }
  0x24   : > { %1289 = vmatprep.subr.bf16.mxu1 %v1408_v10 }
  0x25   : > { %1258 = vmatpush3.bf16.msra.mxu0 %v1392_v2 }
  0x26   : > { %1259 = vmatprep.subr.bf16.mxu0 %v1393_v3 }
  0x27   : > { %1290 = vmatpush3.bf16.msra.mxu1 %v1408_v10  ;;  %p369_p10 = scmp.lt.s32.totalorder %s368_s23, 5 }
  0x28   : > { %1291 = vmatprep.subr.bf16.mxu1 %v1409_v12 }
  0x29   : > { %1260 = vmatpush3.bf16.msra.mxu0 %v1393_v3  ;;  %s1693_s23 = smov (!%p369_p10, %s368_s23), 5 }
  0x2a   : > { %1261 = vmatprep.subr.bf16.mxu0 %v1394_v5  ;;  %s1203_s14 = sshll.u32 %s1693_s23, 6  ;;  %s1636_s23 = scalar_lea.vmem %s1687_s8, %s1204_s30 }
  0x2b   : > { %1292 = vmatpush3.bf16.msra.mxu1 %v1409_v12  ;;  %s1599_s18 = scalar_lea.vmem %s1685_s6, %s1203_s14 }
  0x2c   : > { %1293 = vmatprep.subr.bf16.mxu1 %v1410_v13  ;;  %v1414_v24 = vld [vmem:[%s1599_s18 + $0x38] sm:$0xff]   ;;  %v1415_v25 = vld [vmem:[%s1599_s18 + $0x30] sm:$0xff]   ;;  %v1416_v26 = vld [vmem:[%s1599_s18 + $0x28] sm:$0xff]  }
  0x2d   : > { %1262 = vmatpush3.bf16.msra.mxu0 %v1394_v5  ;;  %v1605_v27 = vld [vmem:[%s1599_s18 + $0x20] sm:$0xff]   ;;  %v1609_v28 = vld [vmem:[%s1599_s18 + $0x18] sm:$0xff]  }
  0x2e   : > { %1263 = vmatprep.subr.bf16.mxu0 %v1395_v6 }
  0x2f   : > { %1294 = vmatpush3.bf16.msra.mxu1 %v1410_v13 }
  0x30   : > { %1295 = vmatprep.subr.bf16.mxu1 %v1411_v21 }
  0x31   : > { %1264 = vmatpush3.bf16.msra.mxu0 %v1395_v6 }
  0x32   : > { %1265 = vmatprep.subr.bf16.mxu0 %v1396_v9 }
  0x33   : > { %1296 = vmatpush3.bf16.msra.mxu1 %v1411_v21 }
  0x34   : > { %1297 = vmatprep.subr.bf16.mxu1 %v1412_v22 }
  0x35   : > { %1266 = vmatpush3.bf16.msra.mxu0 %v1396_v9 }
  0x36   : > { %1267 = vmatprep.subr.bf16.mxu0 %v1397_v11 }
  0x37   : > { %1298 = vmatpush3.bf16.msra.mxu1 %v1412_v22  ;;  %v1419_v22 = vld [vmem:[%s1599_s18 + $0x10] sm:$0xff]  }
  0x38   : > { %1299 = vmatprep.subr.bf16.mxu1 %v1413_v23 }
  0x39   : > { %1268 = vmatpush3.bf16.msra.mxu0 %v1397_v11 }
  0x3a   : > { %1317 = vmatprep.subr.bf16.mxu0 %v1414_v24 }
  0x3b   : > { %1300 = vmatpush3.bf16.msra.mxu1 %v1413_v23  ;;  %v1420_v23 = vld [vmem:[%s1599_s18 + $0x8] sm:$0xff]  }
  0x3c   : > { %1270 = vmatmul.mubr.bf16.vlgmr.msra.gmra.mxu0 %v1399_v14  ;;  %1349 = vmatprep.subr.bf16.mxu1 %v1414_v24 }
  0x3d   : > { %1273 = vmatprep.mubr.bf16.mxu0 %v1400_v15  ;;  %1318 = vmatpush3.bf16.msra.mxu0 %v1414_v24 }
  0x3e   : > { %1319 = vmatprep.subr.bf16.mxu0 %v1415_v25 }
  0x41   : > { %1320 = vmatpush3.bf16.msra.mxu0 %v1415_v25 }
  0x42   : > { %1321 = vmatprep.subr.bf16.mxu0 %v1416_v26 }
  0x44   : > { %1274 = vmatmul.mubr.bf16.gmra.mxu0 %v1401_v16 }
  0x45   : > { %1277 = vmatprep.mubr.bf16.mxu0 %v1402_v17  ;;  %1322 = vmatpush3.bf16.msra.mxu0 %v1416_v26 }
  0x46   : > { %1323 = vmatprep.subr.bf16.mxu0 %v1605_v27 }
  0x49   : > { %1324 = vmatpush3.bf16.msra.mxu0 %v1605_v27 }
  0x4a   : > { %1325 = vmatprep.subr.bf16.mxu0 %v1609_v28 }
  0x4c   : > { %1278 = vmatmul.mubr.bf16.gmra.mxu0 %v1403_v18 }
  0x4d   : > { %1281 = vmatprep.mubr.bf16.mxu0 %v1404_v19  ;;  %1326 = vmatpush3.bf16.msra.mxu0 %v1609_v28 }
  0x4e   : > { %1327 = vmatprep.subr.bf16.mxu0 %v1419_v22 }
  0x51   : > { %1328 = vmatpush3.bf16.msra.mxu0 %v1419_v22 }
  0x52   : > { %1329 = vmatprep.subr.bf16.mxu0 %v1420_v23 }
  0x54   : > { %1282 = vmatmul.mubr.bf16.gmra.mxu0 %v1405_v20 }
  0x55   : > { %1330 = vmatpush3.bf16.msra.mxu0 %v1420_v23 }
  0xfc   : > { %v1271_v29 = vpop.f32.mrf.mxu0 }
  0xfd   : > { %v619_v35 = vadd.f32 %v1271_v29, %v616_v31 }
  0xfe   : > { %v553_v30 = vpop.f32.mrf.mxu0 }
  0xff   : > { %v617_v33 = vadd.f32 %v616_v31, %v553_v30  ;;  %v635_v42 = vmax.f32 %v619_v35, 0.0 }
 0x100   : > { %v1272_v32 = vpop.f32.mrf.mxu0 }
 0x101   : > { %v620_v34 = vadd.f32 %v1272_v32, %v616_v31  ;;  %v633_v40 = vmax.f32 %v617_v33, 0.0 }
 0x102   : > { %v556_v36 = vpop.f32.mrf.mxu0 }
 0x103   : > { %v618_v37 = vadd.f32 %v616_v31, %v556_v36  ;;  %v636_v38 = vmax.f32 %v620_v34, 0.0 }
 0x104   : > { %v1275_v39 = vpop.f32.mrf.mxu0 }
 0x105   : > { %v634_v41 = vmax.f32 %v618_v37, 0.0  ;;  %v650_v45 = vpack.c.bf16 %v636_v38, %v635_v42  ;;  %v623_v49 = vadd.f32 %v1275_v39, %v616_v31 }
 0x106   : > { %v569_v43 = vpop.f32.mrf.mxu0 }
 0x107   : > { %v649_v44 = vpack.c.bf16 %v634_v41, %v633_v40  ;;  %v621_v47 = vadd.f32 %v616_v31, %v569_v43  ;;  %v639_v56 = vmax.f32 %v623_v49, 0.0 }
 0x108   : > { %v1276_v46 = vpop.f32.mrf.mxu0 }
 0x109   : > { %v624_v48 = vadd.f32 %v1276_v46, %v616_v31  ;;  %1301 = vmatprep.mubr.bf16.mxu1 %v649_v44  ;;  %v637_v54 = vmax.f32 %v621_v47, 0.0 }
 0x10a   : > { %v572_v50 = vpop.f32.mrf.mxu0  ;;  %1302 = vmatmul.mubr.bf16.vlgmr.msra.gmra.mxu1 %v650_v45 }
 0x10b   : > { %v622_v51 = vadd.f32 %v616_v31, %v572_v50  ;;  %1357 = vmatpush3.bf16.msra.mxu1 %v1414_v24  ;;  %v640_v52 = vmax.f32 %v624_v48, 0.0  ;;  %v1421_v24 = vld [vmem:[%s1599_s18] sm:$0xff]  }
 0x10c   : > { %v1279_v53 = vpop.f32.mrf.mxu0  ;;  %1350 = vmatprep.subr.bf16.mxu1 %v1415_v25  ;;  %1331 = vmatprep.subr.bf16.mxu0 %v1421_v24 }
 0x10d   : > { %v638_v55 = vmax.f32 %v622_v51, 0.0  ;;  %v652_v59 = vpack.c.bf16 %v640_v52, %v639_v56  ;;  %v627_v63 = vadd.f32 %v1279_v53, %v616_v31  ;;  %1332 = vmatpush3.bf16.msra.mxu0 %v1421_v24 }
 0x10e   : > { %v585_v57 = vpop.f32.mrf.mxu0 }
 0x10f   : > { %v651_v58 = vpack.c.bf16 %v638_v55, %v637_v54  ;;  %1358 = vmatpush3.bf16.msra.mxu1 %v1415_v25  ;;  %v625_v61 = vadd.f32 %v616_v31, %v585_v57  ;;  %v643_v6 = vmax.f32 %v627_v63, 0.0 }
 0x110   : > { %v1280_v60 = vpop.f32.mrf.mxu0  ;;  %1351 = vmatprep.subr.bf16.mxu1 %v1416_v26 }
 0x111   : > { %v628_v62 = vadd.f32 %v1280_v60, %v616_v31  ;;  %1305 = vmatprep.mubr.bf16.mxu1 %v651_v58  ;;  %v641_v4 = vmax.f32 %v625_v61, 0.0 }
 0x112   : > { %v588_v0 = vpop.f32.mrf.mxu0  ;;  %1306 = vmatmul.mubr.bf16.gmra.mxu1 %v652_v59 }
 0x113   : > { %v626_v1 = vadd.f32 %v616_v31, %v588_v0  ;;  %1359 = vmatpush3.bf16.msra.mxu1 %v1416_v26  ;;  %v644_v2 = vmax.f32 %v628_v62, 0.0 }
 0x114   : > { %v1283_v3 = vpop.f32.mrf.mxu0  ;;  %1352 = vmatprep.subr.bf16.mxu1 %v1605_v27 }
 0x115   : > { %v642_v5 = vmax.f32 %v626_v1, 0.0  ;;  %v654_v9 = vpack.c.bf16 %v644_v2, %v643_v6  ;;  %v631_v13 = vadd.f32 %v1283_v3, %v616_v31 }
 0x116   : > { %v601_v7 = vpop.f32.mrf.mxu0 }
 0x117   : > { %v653_v8 = vpack.c.bf16 %v642_v5, %v641_v4  ;;  %1360 = vmatpush3.bf16.msra.mxu1 %v1605_v27  ;;  %v629_v11 = vadd.f32 %v616_v31, %v601_v7  ;;  %v647_v19 = vmax.f32 %v631_v13, 0.0  ;;  %v1182_v27 = vld [vmem:[%s1684_s5] ss:$0 sm:$0xff] }
 0x118   : > { %v1284_v10 = vpop.f32.mrf.mxu0  ;;  %1353 = vmatprep.subr.bf16.mxu1 %v1609_v28 }
 0x119   : > { %v632_v12 = vadd.f32 %v1284_v10, %v616_v31  ;;  %1309 = vmatprep.mubr.bf16.mxu1 %v653_v8  ;;  %v645_v17 = vmax.f32 %v629_v11, 0.0 }
 0x11a   : > { %v604_v14 = vpop.f32.mrf.mxu0  ;;  %1310 = vmatmul.mubr.bf16.gmra.mxu1 %v654_v9 }
 0x11b   : > { %v630_v15 = vadd.f32 %v616_v31, %v604_v14  ;;  %1361 = vmatpush3.bf16.msra.mxu1 %v1609_v28  ;;  %v648_v16 = vmax.f32 %v632_v12, 0.0 }
 0x11c   : > { %1354 = vmatprep.subr.bf16.mxu1 %v1419_v22 }
 0x11d   : > { %v646_v18 = vmax.f32 %v630_v15, 0.0  ;;  %v656_v21 = vpack.c.bf16 %v648_v16, %v647_v19 }
 0x11f   : > { %v655_v20 = vpack.c.bf16 %v646_v18, %v645_v17  ;;  %1362 = vmatpush3.bf16.msra.mxu1 %v1419_v22  ;;  %v1191_v18 = vld [vmem:[%s378_s29] ss:$0 sm:$0xff] }
 0x120   : > { %1355 = vmatprep.subr.bf16.mxu1 %v1420_v23 }
 0x121   : > { %1313 = vmatprep.mubr.bf16.mxu1 %v655_v20 }
 0x122   : > { %1314 = vmatmul.mubr.bf16.gmra.mxu1 %v656_v21 }
 0x123   : > { %1363 = vmatpush3.bf16.msra.mxu1 %v1420_v23 }
 0x124   : > { %1356 = vmatprep.subr.bf16.mxu1 %v1421_v24 }
 0x127   : > { %1364 = vmatpush3.bf16.msra.mxu1 %v1421_v24 }
 0x1ca   : > { %v1303_v25 = vpop.f32.mrf.mxu1 }
 0x1cb   : > { %v771_v31 = vadd.f32 %v1303_v25, %v1182_v27 }
 0x1cc   : > { %v762_v26 = vpop.f32.mrf.mxu1 }
 0x1cd   : > { %v763_v29 = vadd.f32 %v1182_v27, %v762_v26  ;;  %v827_v38 = vmax.f32 %v771_v31, 0.0 }
 0x1ce   : > { %v1304_v28 = vpop.f32.mrf.mxu1 }
 0x1cf   : > { %v774_v30 = vadd.f32 %v1304_v28, %v1182_v27  ;;  %v825_v36 = vmax.f32 %v763_v29, 0.0 }
 0x1d0   : > { %v765_v32 = vpop.f32.mrf.mxu1 }
 0x1d1   : > { %v766_v33 = vadd.f32 %v1182_v27, %v765_v32  ;;  %v828_v34 = vmax.f32 %v774_v30, 0.0 }
 0x1d2   : > { %v1307_v35 = vpop.f32.mrf.mxu1 }
 0x1d3   : > { %v826_v37 = vmax.f32 %v766_v33, 0.0  ;;  %v842_v41 = vpack.c.bf16 %v828_v34, %v827_v38  ;;  %v787_v45 = vadd.f32 %v1307_v35, %v1182_v27 }
 0x1d4   : > { %v778_v39 = vpop.f32.mrf.mxu1 }
 0x1d5   : > { %v841_v40 = vpack.c.bf16 %v826_v37, %v825_v36  ;;  %v779_v43 = vadd.f32 %v1182_v27, %v778_v39  ;;  %v831_v52 = vmax.f32 %v787_v45, 0.0 }
 0x1d6   : > { %v1308_v42 = vpop.f32.mrf.mxu1 }
 0x1d7   : > { %v790_v44 = vadd.f32 %v1308_v42, %v1182_v27  ;;  %1333 = vmatprep.mubr.bf16.mxu0 %v841_v40  ;;  %v829_v50 = vmax.f32 %v779_v43, 0.0 }
 0x1d8   : > { %v781_v46 = vpop.f32.mrf.mxu1  ;;  %1334 = vmatmul.mubr.bf16.vlgmr.msra.gmra.mxu0 %v842_v41 }
 0x1d9   : > { %v782_v47 = vadd.f32 %v1182_v27, %v781_v46  ;;  %v832_v48 = vmax.f32 %v790_v44, 0.0 }
 0x1da   : > { %v1311_v49 = vpop.f32.mrf.mxu1 }
 0x1db   : > { %v830_v51 = vmax.f32 %v782_v47, 0.0  ;;  %v844_v55 = vpack.c.bf16 %v832_v48, %v831_v52  ;;  %v803_v59 = vadd.f32 %v1311_v49, %v1182_v27 }
 0x1dc   : > { %v794_v53 = vpop.f32.mrf.mxu1 }
 0x1dd   : > { %v843_v54 = vpack.c.bf16 %v830_v51, %v829_v50  ;;  %v795_v57 = vadd.f32 %v1182_v27, %v794_v53  ;;  %v835_v2 = vmax.f32 %v803_v59, 0.0 }
 0x1de   : > { %v1312_v56 = vpop.f32.mrf.mxu1 }
 0x1df   : > { %v806_v58 = vadd.f32 %v1312_v56, %v1182_v27  ;;  %1337 = vmatprep.mubr.bf16.mxu0 %v843_v54  ;;  %v833_v0 = vmax.f32 %v795_v57, 0.0 }
 0x1e0   : > { %v797_v60 = vpop.f32.mrf.mxu1  ;;  %1338 = vmatmul.mubr.bf16.gmra.mxu0 %v844_v55 }
 0x1e1   : > { %v798_v61 = vadd.f32 %v1182_v27, %v797_v60  ;;  %v836_v62 = vmax.f32 %v806_v58, 0.0 }
 0x1e2   : > { %v1315_v63 = vpop.f32.mrf.mxu1 }
 0x1e3   : > { %v834_v1 = vmax.f32 %v798_v61, 0.0  ;;  %v846_v5 = vpack.c.bf16 %v836_v62, %v835_v2  ;;  %v819_v9 = vadd.f32 %v1315_v63, %v1182_v27 }
 0x1e4   : > { %v810_v3 = vpop.f32.mrf.mxu1 }
 0x1e5   : > { %v845_v4 = vpack.c.bf16 %v834_v1, %v833_v0  ;;  %v811_v7 = vadd.f32 %v1182_v27, %v810_v3  ;;  %v839_v15 = vmax.f32 %v819_v9, 0.0 }
 0x1e6   : > { %v1316_v6 = vpop.f32.mrf.mxu1 }
 0x1e7   : > { %v822_v8 = vadd.f32 %v1316_v6, %v1182_v27  ;;  %1341 = vmatprep.mubr.bf16.mxu1 %v845_v4  ;;  %v837_v13 = vmax.f32 %v811_v7, 0.0 }
 0x1e8   : > { %v813_v10 = vpop.f32.mrf.mxu1  ;;  %1342 = vmatmul.mubr.bf16.vlgmr.msra.gmra.mxu1 %v846_v5 }
 0x1e9   : > { %v814_v11 = vadd.f32 %v1182_v27, %v813_v10  ;;  %v840_v12 = vmax.f32 %v822_v8, 0.0 }
 0x1eb   : > { %v838_v14 = vmax.f32 %v814_v11, 0.0  ;;  %v848_v17 = vpack.c.bf16 %v840_v12, %v839_v15 }
 0x1ed   : > { %v847_v16 = vpack.c.bf16 %v838_v14, %v837_v13 }
 0x1ef   : > { %1345 = vmatprep.mubr.bf16.mxu1 %v847_v16 }
 0x1f0   : > { %1346 = vmatmul.mubr.bf16.gmra.mxu1 %v848_v17 }
 0x298   : > { %v1335_v19 = vpop.f32.mrf.mxu0 }
 0x299   : > { %v963_v20 = vadd.f32 %v1335_v19, %v1191_v18 }
 0x29a   : > { %v954_v21 = vpop.f32.mrf.mxu0 }
 0x29b   : > { %1020 = vst.msk [vmem:[%s1636_s23 + $0x10] sm:$0xff] %vm1017_vm0, %v963_v20  ;;  %v955_v22 = vadd.f32 %v1191_v18, %v954_v21 }
 0x29c   : > { %v1336_v23 = vpop.f32.mrf.mxu0 }
 0x29d   : > { %1018 = vst.msk [vmem:[%s1636_s23] sm:$0xff] %vm1017_vm0, %v955_v22  ;;  %v966_v24 = vadd.f32 %v1336_v23, %v1191_v18 }
 0x29e   : > { %v957_v25 = vpop.f32.mrf.mxu0 }
 0x29f   : > { %1021 = vst.msk [vmem:[%s1636_s23 + $0x18] sm:$0xff] %vm1017_vm0, %v966_v24  ;;  %v958_v26 = vadd.f32 %v1191_v18, %v957_v25 }
 0x2a0   : > { %v1339_v27 = vpop.f32.mrf.mxu0 }
 0x2a1   : > { %1019 = vst.msk [vmem:[%s1636_s23 + $0x8] sm:$0xff] %vm1017_vm0, %v958_v26  ;;  %v979_v28 = vadd.f32 %v1339_v27, %v1191_v18 }
 0x2a2   : > { %v970_v29 = vpop.f32.mrf.mxu0 }
 0x2a3   : > { %1024 = vst.msk [vmem:[%s1636_s23 + $0x30] sm:$0xff] %vm1017_vm0, %v979_v28  ;;  %v971_v30 = vadd.f32 %v1191_v18, %v970_v29 }
 0x2a4   : > { %v1340_v31 = vpop.f32.mrf.mxu0 }
 0x2a5   : > { %1022 = vst.msk [vmem:[%s1636_s23 + $0x20] sm:$0xff] %vm1017_vm0, %v971_v30  ;;  %v982_v32 = vadd.f32 %v1340_v31, %v1191_v18 }
 0x2a6   : > { %v973_v33 = vpop.f32.mrf.mxu0 }
 0x2a7   : > { %1025 = vst.msk [vmem:[%s1636_s23 + $0x38] sm:$0xff] %vm1017_vm0, %v982_v32  ;;  %v974_v34 = vadd.f32 %v1191_v18, %v973_v33 }
 0x2a8   : > { %v1343_v35 = vpop.f32.mrf.mxu1 }
 0x2a9   : > { %1023 = vst.msk [vmem:[%s1636_s23 + $0x28] sm:$0xff] %vm1017_vm0, %v974_v34  ;;  %v995_v36 = vadd.f32 %v1343_v35, %v1191_v18 }
 0x2aa   : > { %v986_v37 = vpop.f32.mrf.mxu1 }
 0x2ab   : > { %1028 = vst.msk [vmem:[%s1636_s23 + $0x50] sm:$0xff] %vm1017_vm0, %v995_v36  ;;  %v987_v38 = vadd.f32 %v1191_v18, %v986_v37 }
 0x2ac   : > { %v1344_v39 = vpop.f32.mrf.mxu1 }
 0x2ad   : > { %1026 = vst.msk [vmem:[%s1636_s23 + $0x40] sm:$0xff] %vm1017_vm0, %v987_v38  ;;  %v998_v40 = vadd.f32 %v1344_v39, %v1191_v18 }
 0x2ae   : > { %v989_v41 = vpop.f32.mrf.mxu1 }
 0x2af   : > { %1029 = vst.msk [vmem:[%s1636_s23 + $0x58] sm:$0xff] %vm1017_vm0, %v998_v40  ;;  %v990_v42 = vadd.f32 %v1191_v18, %v989_v41 }
 0x2b0   : > { %v1347_v43 = vpop.f32.mrf.mxu1 }
 0x2b1   : > { %1027 = vst.msk [vmem:[%s1636_s23 + $0x48] sm:$0xff] %vm1017_vm0, %v990_v42  ;;  %v1011_v44 = vadd.f32 %v1347_v43, %v1191_v18 }
 0x2b2   : > { %v1002_v45 = vpop.f32.mrf.mxu1 }
 0x2b3   : > { %1032 = vst.msk [vmem:[%s1636_s23 + $0x70] sm:$0xff] %vm1017_vm0, %v1011_v44  ;;  %v1003_v46 = vadd.f32 %v1191_v18, %v1002_v45 }
 0x2b4   : > { %v1348_v47 = vpop.f32.mrf.mxu1 }
 0x2b5   : > { %1030 = vst.msk [vmem:[%s1636_s23 + $0x60] sm:$0xff] %vm1017_vm0, %v1003_v46  ;;  %v1014_v48 = vadd.f32 %v1348_v47, %v1191_v18 }
 0x2b6   : > { %v1005_v49 = vpop.f32.mrf.mxu1 }
 0x2b7   : > { %1033 = vst.msk [vmem:[%s1636_s23 + $0x78] sm:$0xff] %vm1017_vm0, %v1014_v48  ;;  %v1006_v50 = vadd.f32 %v1191_v18, %v1005_v49 }
 0x2b9   : > { %1031 = vst.msk [vmem:[%s1636_s23 + $0x68] sm:$0xff] %vm1017_vm0, %v1006_v50 }
 0x2ba PF: > { %s24_s12 = sadd.s32 1, %s1458_s12   ;;  %s1688_s10 = smov %s1454_s11 }
 0x2bb   : > { %p21_p12 = scmp.ge.s32.totalorder %s24_s12, 4   ;;  %s1689_s11 = smov %s1691_s0 }
 0x2bd   :  { %23 = sbr.rel (!%p21_p12) target bundleno = 17 (0x11), region = 87 }

// kernel: spd_bbox_normal_net.4
= control target key start
LH: loop header
LB: loop body
LE: loop exit
PB: predicated region body
PF: predicated region fallthrough
CT: control target
= control target key end

     0   :  { %s1354_s21 = smov 0   ;;  %s1356_s22 = smov 0   ;;  %s1608_s0 = inlined_call_operand.vmem [shape: f32[2,128,3], index: 0, kind: input, shape index: {}]   ;;  %s1609_s1 = inlined_call_operand.vmem [shape: f32[2,1,64], index: 1, kind: input, shape index: {}]   ;;  %s1610_s2 = inlined_call_operand.vmem [shape: bf16[3,64], index: 2, kind: input, shape index: {}]   ;;  %s1611_s3 = inlined_call_operand.vmem [shape: bf16[64,128], index: 3, kind: input, shape index: {}]   ;;  %s1612_s4 = inlined_call_operand.vmem [shape: f32[1,128], index: 4, kind: input, shape index: {}]   ;;  %s1613_s5 = inlined_call_operand.vmem [shape: bf16[2,128,128], index: 5, kind: output, shape index: {0}]   ;;  %s1614_s6 = inlined_call_operand.vmem [shape: f32[2,1,128], index: 6, kind: output, shape index: {1}]  }
   0x1   :  { %s1358_s23 = smov 0  }
   0x2 LB: > { %s29_s24 = sadd.s32 1, %s1309_s22  ;;  %p1091_p0 = scmp.ge.s32.totalorder %s1313_s23, 1  ;;  %s1313_s23 = sphi %s1358_s23, %s17_s23   ;;  %s1309_s22 = sphi %s1356_s22, %s1616_s22   ;;  %s1305_s21 = sphi %s1354_s21, %s1615_s21  }
   0x3   : > { %p31_p1 = scmp.ge.s32.totalorder %s29_s24, 2  ;;  %p244_p2 = scmp.lt.s32.totalorder %s1313_s23, 3 }
   0x5   : > { %s1618_s24 = smov (%p31_p1, %s29_s24), 0  ;;  %p245_p3 = pnand %p1091_p0, %p244_p2 }
   0x6   : > { %p289_p4 = scmp.lt.s32.totalorder (!%p245_p3), %s1305_s21, 1 }
   0x7   : > { %248 = sbr.rel (%p245_p3) target bundleno = 504 (0x1f8), region = 40 }
   0xc   : > { %v1315_v0 = vmov 1   ;;  %v1316_v1 = vmov 0   ;;  %s1620_s21 = smov (!%p289_p4, %s1305_s21), 1  ;;  %v1317_v9 = vmov 2   ;;  %v1287_v14 = vld [vmem:[%s1611_s3 + $0x18] sm:$0xff]   ;;  %v1288_v17 = vld [vmem:[%s1611_s3 + $0x10] sm:$0xff]   ;;  %v418_v38 = vlaneseq }
   0xd   : > { %1266 = vset.pattern.permute.xlu1 %v1315_v0  ;;  %1265 = vset.pattern.permute.xlu0 %v1316_v1  ;;  %s1128_s25 = sshll.u32 %s1620_s21, 7  ;;  %v1289_v18 = vld [vmem:[%s1611_s3 + $0x8] sm:$0xff]   ;;  %v1290_v19 = vld [vmem:[%s1611_s3] sm:$0xff]   ;;  %s300_s17 = scalar_lea.vmem %s1609_s1, %s1620_s21  ;;  %vm724_vm0 = vcmask 523264  }
   0xe   : > { %s1380_s28 = scalar_lea.vmem %s1608_s0, %s1128_s25  ;;  %1205 = vmatprep.subr.bf16.mxu0 %v1287_v14  ;;  %1229 = vmatprep.subr.bf16.mxu1 %v1287_v14  ;;  %v419_v41 = vshrl.u32 %v418_v38, 7  ;;  %v336_v42 = vld [vmem:[%s1610_s2] sm:$0x3]  ;;  %s1559_s20 = scalar_lea.vmem %s1614_s6, %s1620_s21 }
   0xf   : > { %v320_v2 = vld [vmem:[%s1380_s28] sm:$0xff]  ;;  %v321_v3 = vld [vmem:[%s1380_s28 + $0x8] sm:$0xff]  ;;  %v322_v4 = vld [vmem:[%s1380_s28 + $0x10] sm:$0xff]  ;;  %1206 = vmatpush3.bf16.msra.mxu0 %v1287_v14  ;;  %1233 = vmatpush3.bf16.msra.mxu1 %v1287_v14  ;;  %v337_v45 = vunpack.c.l.bf16 %v336_v42  ;;  %s1129_s27 = sshll.u32 %s1620_s21, 6 }
  0x10   : > { %439 = vperm.xlu1 %1266, %v320_v2   ;;  %340 = vperm.xlu0 %1265, %v320_v2   ;;  %v323_v5 = vld [vmem:[%s1380_s28 + $0x18] sm:$0xff]  ;;  %v328_v6 = vld [vmem:[%s1380_s28 + $0x40] sm:$0xff]  ;;  %v1390_v7 = vld [vmem:[%s1380_s28 + $0x28] sm:$0xff]  ;;  %v504_v46 = vsub.s32 1, %v419_v41  ;;  %v420_v47 = vsub.s32 0, %v419_v41  ;;  %v604_v48 = vsub.s32 2, %v419_v41  ;;  %s1575_s30 = scalar_lea.vmem %s1613_s5, %s1129_s27 }
  0x11   : > { %v1394_v8 = vld [vmem:[%s1380_s28 + $0x30] sm:$0xff]  ;;  %v1399_v10 = vld [vmem:[%s1380_s28 + $0x60] sm:$0xff]  ;;  %v329_v11 = vld [vmem:[%s1380_s28 + $0x48] sm:$0xff]  ;;  %1207 = vmatprep.subr.bf16.mxu0 %v1288_v17  ;;  %1230 = vmatprep.subr.bf16.mxu1 %v1288_v17 }
  0x12   : > { %v330_v12 = vld [vmem:[%s1380_s28 + $0x50] sm:$0xff]  ;;  %v1410_v13 = vld [vmem:[%s1380_s28 + $0x68] sm:$0xff]  ;;  %v331_v15 = vld [vmem:[%s1380_s28 + $0x58] sm:$0xff]  ;;  %v1461_v50 = vrot.slane %v337_v45, %v504_v46  ;;  %v1463_v51 = vrot.slane %v337_v45, %v420_v47  ;;  %v1466_v54 = vrot.slane %v337_v45, %v604_v48 }
  0x13   : > { %v334_v16 = vld [vmem:[%s1380_s28 + $0x70] sm:$0xff]  ;;  %1208 = vmatpush3.bf16.msra.mxu0 %v1288_v17  ;;  %1234 = vmatpush3.bf16.msra.mxu1 %v1288_v17  ;;  %v324_v20 = vld [vmem:[%s1380_s28 + $0x20] sm:$0xff]  ;;  %v335_v21 = vld [vmem:[%s1380_s28 + $0x78] sm:$0xff] }
  0x14   : > { %443 = vperm.xlu1 %1266, %v321_v3   ;;  %345 = vperm.xlu0 %1265, %v321_v3   ;;  %v327_v22 = vld [vmem:[%s1380_s28 + $0x38] sm:$0xff] }
  0x15   : > { %1209 = vmatprep.subr.bf16.mxu0 %v1289_v18  ;;  %1231 = vmatprep.subr.bf16.mxu1 %v1289_v18 }
  0x17   : > { %1210 = vmatpush3.bf16.msra.mxu0 %v1289_v18  ;;  %1235 = vmatpush3.bf16.msra.mxu1 %v1289_v18 }
  0x18   : > { %1267 = vset.pattern.permute.xlu1 %v1316_v1  ;;  %350 = vperm.xlu0 %1265, %v322_v4  }
  0x19   : > { %355 = vperm.xlu1 %1267, %v323_v5   ;;  %1211 = vmatprep.subr.bf16.mxu0 %v1290_v19 }
  0x1a   : > { %1232 = vmatprep.subr.bf16.mxu1 %v1290_v19 }
  0x1b   : > { %1212 = vmatpush3.bf16.msra.mxu0 %v1290_v19  ;;  %1236 = vmatpush3.bf16.msra.mxu1 %v1290_v19 }
  0x1c   : > { %380 = vperm.xlu0 %1265, %v328_v6  }
  0x1d   : > { %1268 = vset.pattern.permute.xlu1 %v1315_v0 }
  0x1e   : > { %451 = vperm.xlu1 %1268, %v323_v5  }
  0x20   : > { %365 = vperm.xlu0 %1265, %v1390_v7  }
  0x22   : > { %1269 = vset.pattern.permute.xlu1 %v1317_v9 }
  0x23   : > { %539 = vperm.xlu1 %1269, %v320_v2  }
  0x24   : > { %370 = vperm.xlu0 %1265, %v1394_v8  }
  0x27   : > { %547 = vperm.xlu1 %1269, %v322_v4  }
  0x28   : > { %400 = vperm.xlu0 %1265, %v1399_v10  }
  0x2b   : > { %551 = vperm.xlu1 %1269, %v323_v5  }
  0x2c   : > { %1280 = vset.pattern.permute.xlu0 %v1315_v0 }
  0x2d   : > { %447 = vperm.xlu0 %1280, %v322_v4  }
  0x2f   : > { %1270 = vset.pattern.permute.xlu1 %v1316_v1 }
  0x30   : > { %385 = vperm.xlu1 %1270, %v329_v11  }
  0x31   : > { %475 = vperm.xlu0 %1280, %v329_v11  }
  0x34   : > { %1271 = vset.pattern.permute.xlu1 %v1315_v0 }
  0x35   : > { %471 = vperm.xlu1 %1271, %v328_v6   ;;  %479 = vperm.xlu0 %1280, %v330_v12  }
  0x39   : > { %1272 = vset.pattern.permute.xlu1 %v1316_v1  ;;  %463 = vperm.xlu0 %1280, %v1394_v8  }
  0x3a   : > { %390 = vperm.xlu1 %1272, %v330_v12  }
  0x3d   : > { %491 = vperm.xlu0 %1280, %v1410_v13  }
  0x3e   : > { %395 = vperm.xlu1 %1272, %v331_v15  }
  0x41   : > { %495 = vperm.xlu0 %1280, %v334_v16  }
  0x42   : > { %1273 = vset.pattern.permute.xlu1 %v1315_v0 }
  0x43   : > { %483 = vperm.xlu1 %1273, %v331_v15  }
  0x45   : > { %1284 = vset.pattern.permute.xlu0 %v1317_v9 }
  0x46   : > { %543 = vperm.xlu0 %1284, %v321_v3  }
  0x47   : > { %1274 = vset.pattern.permute.xlu1 %v1317_v9 }
  0x48   : > { %575 = vperm.xlu1 %1274, %v329_v11  }
  0x4a   : > { %571 = vperm.xlu0 %1284, %v328_v6  }
  0x4c   : > { %579 = vperm.xlu1 %1274, %v330_v12  }
  0x4e   : > { %583 = vperm.xlu0 %1284, %v331_v15  }
  0x50   : > { %1275 = vset.pattern.permute.xlu1 %v1316_v1 }
  0x51   : > { %360 = vperm.xlu1 %1275, %v324_v20  }
  0x52   : > { %559 = vperm.xlu0 %1284, %v1390_v7  }
  0x55   : > { %1276 = vset.pattern.permute.xlu1 %v1315_v0 }
  0x56   : > { %455 = vperm.xlu1 %1276, %v324_v20   ;;  %587 = vperm.xlu0 %1284, %v1399_v10  }
  0x5a   : > { %459 = vperm.xlu1 %1276, %v1390_v7   ;;  %599 = vperm.xlu0 %1284, %v335_v21  }
  0x5e   : > { %1277 = vset.pattern.permute.xlu1 %v1316_v1 }
  0x5f   : > { %375 = vperm.xlu1 %1277, %v327_v22  }
  0x63   : > { %1278 = vset.pattern.permute.xlu1 %v1315_v0 }
  0x64   : > { %467 = vperm.xlu1 %1278, %v327_v22  }
  0x68   : > { %1279 = vset.pattern.permute.xlu1 %v1317_v9 }
  0x69   : > { %555 = vperm.xlu1 %1279, %v324_v20  }
  0x6d   : > { %563 = vperm.xlu1 %1279, %v1394_v8  }
  0x71   : > { %567 = vperm.xlu1 %1279, %v327_v22  }
  0x75   : > { %1281 = vset.pattern.permute.xlu1 %v1316_v1 }
  0x76   : > { %405 = vperm.xlu1 %1281, %v1410_v13  }
  0x7a   : > { %1282 = vset.pattern.permute.xlu1 %v1315_v0 }
  0x7b   : > { %487 = vperm.xlu1 %1282, %v1399_v10   ;;  %v1486_v10 = vld [vmem:[%s300_s17] ss:$0 sm:$0xff] }
  0x7f   : > { %1283 = vset.pattern.permute.xlu1 %v1316_v1 }
  0x80   : > { %410 = vperm.xlu1 %1283, %v334_v16  }
  0x84   : > { %415 = vperm.xlu1 %1283, %v335_v21  }
  0x88   : > { %1285 = vset.pattern.permute.xlu1 %v1315_v0 }
  0x89   : > { %499 = vperm.xlu1 %1285, %v335_v21  }
  0x8b   : > { %v440_v23 = vpop.permute.xlu1 %439  ;;  %v341_v24 = vpop.permute.xlu0 %340 }
  0x8c   : > { %v506_v57 = vmul.f32 %v1461_v50, %v440_v23  ;;  %v422_v58 = vmul.f32 %v1463_v51, %v341_v24 }
  0x8d   : > { %1286 = vset.pattern.permute.xlu1 %v1317_v9 }
  0x8e   : > { %591 = vperm.xlu1 %1286, %v1410_v13   ;;  %v522_v0 = vadd.f32 %v506_v57, %v422_v58 }
  0x8f   : > { %v444_v25 = vpop.permute.xlu1 %443  ;;  %v346_v26 = vpop.permute.xlu0 %345 }
  0x90   : > { %v507_v4 = vmul.f32 %v1461_v50, %v444_v25  ;;  %v423_v5 = vmul.f32 %v1463_v51, %v346_v26 }
  0x92   : > { %595 = vperm.xlu1 %1286, %v334_v16   ;;  %v523_v15 = vadd.f32 %v507_v4, %v423_v5 }
  0x93   : > { %v351_v27 = vpop.permute.xlu0 %350 }
  0x94   : > { %v356_v28 = vpop.permute.xlu1 %355  ;;  %v424_v53 = vmul.f32 %v1463_v51, %v351_v27 }
  0x95   : > { %v425_v1 = vmul.f32 %v1463_v51, %v356_v28 }
  0x97   : > { %v381_v29 = vpop.permute.xlu0 %380 }
  0x98   : > { %v430_v16 = vmul.f32 %v1463_v51, %v381_v29 }
  0x99   : > { %v452_v30 = vpop.permute.xlu1 %451 }
  0x9a   : > { %v509_v60 = vmul.f32 %v1461_v50, %v452_v30 }
  0x9b   : > { %v1450_v31 = vpop.permute.xlu0 %365 }
  0x9c   : > { %v525_v7 = vadd.f32 %v509_v60, %v425_v1 }
  0x9e   : > { %v540_v32 = vpop.permute.xlu1 %539 }
  0x9f   : > { %v1452_v33 = vpop.permute.xlu0 %370  ;;  %v606_v61 = vmul.f32 %v1466_v54, %v540_v32 }
  0xa1   : > { %v622_v8 = vadd.f32 %v606_v61, %v522_v0 }
  0xa2   : > { %v548_v34 = vpop.permute.xlu1 %547 }
  0xa3   : > { %v1454_v35 = vpop.permute.xlu0 %400  ;;  %v608_v2 = vmul.f32 %v1466_v54, %v548_v34  ;;  %v645_v23 = vadd.f32 %v1486_v10, %v622_v8 }
  0xa5   : > { %v661_v41 = vmax.f32 %v645_v23, 0.0 }
  0xa6   : > { %v552_v36 = vpop.permute.xlu1 %551 }
  0xa7   : > { %v609_v3 = vmul.f32 %v1466_v54, %v552_v36 }
  0xa8   : > { %v448_v37 = vpop.permute.xlu0 %447 }
  0xa9   : > { %v508_v55 = vmul.f32 %v1461_v50, %v448_v37  ;;  %v625_v13 = vadd.f32 %v609_v3, %v525_v7 }
  0xab   : > { %v386_v39 = vpop.permute.xlu1 %385  ;;  %v524_v62 = vadd.f32 %v508_v55, %v424_v53  ;;  %v648_v27 = vadd.f32 %v1486_v10, %v625_v13 }
  0xac   : > { %v476_v40 = vpop.permute.xlu0 %475  ;;  %v431_v11 = vmul.f32 %v1463_v51, %v386_v39 }
  0xad   : > { %v624_v9 = vadd.f32 %v608_v2, %v524_v62  ;;  %v515_v12 = vmul.f32 %v1461_v50, %v476_v40  ;;  %v664_v46 = vmax.f32 %v648_v27, 0.0 }
  0xaf   : > { %v647_v19 = vadd.f32 %v1486_v10, %v624_v9  ;;  %v531_v24 = vadd.f32 %v515_v12, %v431_v11  ;;  %v427_v12 = vmul.f32 %v1463_v51, %v1450_v31 }
  0xb0   : > { %v472_v43 = vpop.permute.xlu1 %471  ;;  %v480_v44 = vpop.permute.xlu0 %479 }
  0xb1   : > { %v514_v17 = vmul.f32 %v1461_v50, %v472_v43  ;;  %v516_v20 = vmul.f32 %v1461_v50, %v480_v44  ;;  %v663_v37 = vmax.f32 %v647_v19, 0.0 }
  0xb3   : > { %v530_v30 = vadd.f32 %v514_v17, %v430_v16  ;;  %v678_v58 = vpack.c.bf16 %v664_v46, %v663_v37 }
  0xb4   : > { %v1459_v49 = vpop.permute.xlu0 %463 }
  0xb5   : > { %v391_v52 = vpop.permute.xlu1 %390 }
  0xb6   : > { %v432_v21 = vmul.f32 %v1463_v51, %v391_v52 }
  0xb8   : > { %v1469_v56 = vpop.permute.xlu0 %491  ;;  %v532_v38 = vadd.f32 %v516_v20, %v432_v21  ;;  %v428_v20 = vmul.f32 %v1463_v51, %v1452_v33  ;;  %v512_v21 = vmul.f32 %v1461_v50, %v1459_v49 }
  0xb9   : > { %v396_v59 = vpop.permute.xlu1 %395 }
  0xba   : > { %v433_v39 = vmul.f32 %v1463_v51, %v396_v59 }
  0xbc   : > { %v1475_v63 = vpop.permute.xlu0 %495 }
  0xbe   : > { %v484_v6 = vpop.permute.xlu1 %483 }
  0xbf   : > { %v517_v28 = vmul.f32 %v1461_v50, %v484_v6 }
  0xc1   : > { %v544_v14 = vpop.permute.xlu0 %543  ;;  %v533_v47 = vadd.f32 %v517_v28, %v433_v39 }
  0xc2   : > { %v607_v18 = vmul.f32 %v1466_v54, %v544_v14 }
  0xc3   : > { %v576_v22 = vpop.permute.xlu1 %575 }
  0xc4   : > { %v623_v25 = vadd.f32 %v607_v18, %v523_v15  ;;  %v615_v26 = vmul.f32 %v1466_v54, %v576_v22 }
  0xc5   : > { %v572_v29 = vpop.permute.xlu0 %571 }
  0xc6   : > { %v631_v32 = vadd.f32 %v615_v26, %v531_v24  ;;  %v614_v34 = vmul.f32 %v1466_v54, %v572_v29  ;;  %v646_v36 = vadd.f32 %v1486_v10, %v623_v25  ;;  %v528_v26 = vadd.f32 %v512_v21, %v428_v20 }
  0xc7   : > { %v580_v40 = vpop.permute.xlu1 %579 }
  0xc8   : > { %v630_v42 = vadd.f32 %v614_v34, %v530_v30  ;;  %v616_v43 = vmul.f32 %v1466_v54, %v580_v40  ;;  %v662_v44 = vmax.f32 %v646_v36, 0.0  ;;  %v654_v45 = vadd.f32 %v1486_v10, %v631_v32 }
  0xc9   : > { %v584_v48 = vpop.permute.xlu0 %583 }
  0xca   : > { %v632_v52 = vadd.f32 %v616_v43, %v532_v38  ;;  %v617_v53 = vmul.f32 %v1466_v54, %v584_v48  ;;  %v677_v55 = vpack.c.bf16 %v662_v44, %v661_v41  ;;  %v653_v57 = vadd.f32 %v1486_v10, %v630_v42 }
  0xcb   : > { %v670_v0 = vmax.f32 %v654_v45, 0.0 }
  0xcc   : > { %v655_v59 = vadd.f32 %v1486_v10, %v632_v52  ;;  %v633_v60 = vadd.f32 %v617_v53, %v533_v47  ;;  %v361_v61 = vpop.permute.xlu1 %360  ;;  %1213 = vmatprep.mubr.msk.bf16.mxu0 %vm724_vm0, %v677_v55  ;;  %v669_v62 = vmax.f32 %v653_v57, 0.0  ;;  %v434_v55 = vmul.f32 %v1463_v51, %v1454_v35 }
  0xcd   : > { %1214 = vmatmul.mubr.msk.bf16.vlgmr.msra.gmra.mxu0 %vm724_vm0, %v678_v58  ;;  %v560_v11 = vpop.permute.xlu0 %559  ;;  %v426_v17 = vmul.f32 %v1463_v51, %v361_v61 }
  0xce   : > { %v656_v1 = vadd.f32 %v1486_v10, %v633_v60  ;;  %v681_v2 = vpack.c.bf16 %v670_v0, %v669_v62  ;;  %v671_v3 = vmax.f32 %v655_v59, 0.0  ;;  %v611_v14 = vmul.f32 %v1466_v54, %v560_v11 }
  0xd0   : > { %v672_v4 = vmax.f32 %v656_v1, 0.0  ;;  %1221 = vmatprep.mubr.msk.bf16.mxu1 %vm724_vm0, %v681_v2  ;;  %v519_v1 = vmul.f32 %v1461_v50, %v1469_v56 }
  0xd1   : > { %v456_v5 = vpop.permute.xlu1 %455  ;;  %v588_v53 = vpop.permute.xlu0 %587 }
  0xd2   : > { %v682_v6 = vpack.c.bf16 %v672_v4, %v671_v3  ;;  %v510_v16 = vmul.f32 %v1461_v50, %v456_v5  ;;  %v618_v57 = vmul.f32 %v1466_v54, %v588_v53 }
  0xd4   : > { %1222 = vmatmul.mubr.msk.bf16.vlgmr.msra.gmra.mxu1 %vm724_vm0, %v682_v6  ;;  %v526_v22 = vadd.f32 %v510_v16, %v426_v17 }
  0xd5   : > { %v460_v7 = vpop.permute.xlu1 %459  ;;  %v600_v0 = vpop.permute.xlu0 %599 }
  0xd6   : > { %v511_v9 = vmul.f32 %v1461_v50, %v460_v7  ;;  %v621_v35 = vmul.f32 %v1466_v54, %v600_v0 }
  0xd8   : > { %v527_v13 = vadd.f32 %v511_v9, %v427_v12 }
  0xda   : > { %v376_v8 = vpop.permute.xlu1 %375  ;;  %v627_v18 = vadd.f32 %v611_v14, %v527_v13 }
  0xdb   : > { %v429_v33 = vmul.f32 %v1463_v51, %v376_v8  ;;  %v520_v8 = vmul.f32 %v1461_v50, %v1475_v63 }
  0xdc   : > { %v650_v31 = vadd.f32 %v1486_v10, %v627_v18 }
  0xde   : > { %v666_v30 = vmax.f32 %v650_v31, 0.0 }
  0xdf   : > { %v468_v15 = vpop.permute.xlu1 %467 }
  0xe0   : > { %v513_v27 = vmul.f32 %v1461_v50, %v468_v15 }
  0xe2   : > { %v529_v36 = vadd.f32 %v513_v27, %v429_v33 }
  0xe4   : > { %v556_v19 = vpop.permute.xlu1 %555 }
  0xe5   : > { %v610_v23 = vmul.f32 %v1466_v54, %v556_v19 }
  0xe7   : > { %v626_v24 = vadd.f32 %v610_v23, %v526_v22 }
  0xe8   : > { %v564_v25 = vpop.permute.xlu1 %563 }
  0xe9   : > { %v649_v28 = vadd.f32 %v1486_v10, %v626_v24  ;;  %v612_v29 = vmul.f32 %v1466_v54, %v564_v25 }
  0xeb   : > { %v665_v32 = vmax.f32 %v649_v28, 0.0  ;;  %v628_v34 = vadd.f32 %v612_v29, %v528_v26 }
  0xec   : > { %v568_v49 = vpop.permute.xlu1 %567 }
  0xed   : > { %v679_v37 = vpack.c.bf16 %v666_v30, %v665_v32  ;;  %v613_v38 = vmul.f32 %v1466_v54, %v568_v49  ;;  %v651_v39 = vadd.f32 %v1486_v10, %v628_v34 }
  0xef   : > { %v629_v40 = vadd.f32 %v613_v38, %v529_v36  ;;  %1217 = vmatprep.mubr.msk.bf16.mxu0 %vm724_vm0, %v679_v37  ;;  %v667_v43 = vmax.f32 %v651_v39, 0.0 }
  0xf1   : > { %v652_v41 = vadd.f32 %v1486_v10, %v629_v40  ;;  %v406_v42 = vpop.permute.xlu1 %405 }
  0xf2   : > { %v435_v61 = vmul.f32 %v1463_v51, %v406_v42 }
  0xf3   : > { %v668_v44 = vmax.f32 %v652_v41, 0.0 }
  0xf4   : > { %v535_v5 = vadd.f32 %v519_v1, %v435_v61 }
  0xf5   : > { %v680_v45 = vpack.c.bf16 %v668_v44, %v667_v43 }
  0xf6   : > { %v488_v46 = vpop.permute.xlu1 %487 }
  0xf7   : > { %1218 = vmatmul.mubr.msk.bf16.gmra.mxu0 %vm724_vm0, %v680_v45  ;;  %v518_v52 = vmul.f32 %v1461_v50, %v488_v46 }
  0xf9   : > { %v534_v58 = vadd.f32 %v518_v52, %v434_v55 }
  0xfb   : > { %v411_v47 = vpop.permute.xlu1 %410  ;;  %v634_v2 = vadd.f32 %v618_v57, %v534_v58 }
  0xfc   : > { %v436_v6 = vmul.f32 %v1463_v51, %v411_v47 }
  0xfd   : > { %v657_v9 = vadd.f32 %v1486_v10, %v634_v2 }
  0xfe   : > { %v536_v56 = vadd.f32 %v520_v8, %v436_v6 }
  0xff   : > { %v416_v48 = vpop.permute.xlu1 %415  ;;  %v673_v16 = vmax.f32 %v657_v9, 0.0 }
 0x100   : > { %v437_v62 = vmul.f32 %v1463_v51, %v416_v48 }
 0x104   : > { %v500_v59 = vpop.permute.xlu1 %499 }
 0x105   : > { %v521_v60 = vmul.f32 %v1461_v50, %v500_v59 }
 0x107   : > { %v537_v3 = vadd.f32 %v521_v60, %v437_v62 }
 0x109   : > { %v592_v4 = vpop.permute.xlu1 %591  ;;  %v637_v11 = vadd.f32 %v621_v35, %v537_v3 }
 0x10a   : > { %v619_v7 = vmul.f32 %v1466_v54, %v592_v4 }
 0x10b   : > { %v660_v17 = vadd.f32 %v1486_v10, %v637_v11 }
 0x10c   : > { %v635_v12 = vadd.f32 %v619_v7, %v535_v5 }
 0x10d   : > { %v596_v13 = vpop.permute.xlu1 %595  ;;  %v676_v63 = vmax.f32 %v660_v17, 0.0 }
 0x10e   : > { %v658_v14 = vadd.f32 %v1486_v10, %v635_v12  ;;  %v620_v15 = vmul.f32 %v1466_v54, %v596_v13  ;;  %v1318_v54 = vmov 0.0  }
 0x10f   : > { %319 = vst [vmem:[%s1559_s20] sm:$0x1] %v1318_v54 }
 0x110   : > { %v674_v51 = vmax.f32 %v658_v14, 0.0  ;;  %v636_v18 = vadd.f32 %v620_v15, %v536_v56 }
 0x112   : > { %v683_v19 = vpack.c.bf16 %v674_v51, %v673_v16  ;;  %v659_v50 = vadd.f32 %v1486_v10, %v636_v18  ;;  %v1565_v10 = vld [vmem:[%s1612_s4] ss:$0 sm:$0xff] }
 0x114   : > { %v675_v20 = vmax.f32 %v659_v50, 0.0  ;;  %1225 = vmatprep.mubr.msk.bf16.mxu1 %vm724_vm0, %v683_v19 }
 0x116   : > { %v684_v21 = vpack.c.bf16 %v676_v63, %v675_v20 }
 0x118   : > { %1226 = vmatmul.mubr.msk.bf16.gmra.mxu1 %vm724_vm0, %v684_v21 }
 0x18d   : > { %v1215_v22 = vpop.f32.mrf.mxu0 }
 0x18e   : > { %v792_v31 = vadd.f32 %v1215_v22, %v1565_v10 }
 0x18f   : > { %v783_v23 = vpop.f32.mrf.mxu0 }
 0x190   : > { %v784_v25 = vadd.f32 %v1565_v10, %v783_v23  ;;  %v848_v28 = vmax.f32 %v792_v31, 0.0 }
 0x191   : > { %v1216_v24 = vpop.f32.mrf.mxu0 }
 0x192   : > { %v795_v26 = vadd.f32 %v1216_v24, %v1565_v10  ;;  %v846_v32 = vmax.f32 %v784_v25, 0.0 }
 0x193   : > { %v786_v27 = vpop.f32.mrf.mxu0 }
 0x194   : > { %v849_v29 = vmax.f32 %v795_v26, 0.0  ;;  %v787_v30 = vadd.f32 %v1565_v10, %v786_v27  ;;  %v1223_v33 = vpop.f32.mrf.mxu1 }
 0x195   : > { %v824_v37 = vadd.f32 %v1223_v33, %v1565_v10 }
 0x196   : > { %v1154_v34 = vpack.c.bf16 %v849_v29, %v848_v28  ;;  %v847_v49 = vmax.f32 %v787_v30, 0.0  ;;  %v815_v36 = vpop.f32.mrf.mxu1 }
 0x197   : > { %v816_v40 = vadd.f32 %v1565_v10, %v815_v36  ;;  %v856_v43 = vmax.f32 %v824_v37, 0.0 }
 0x198   : > { %1186 = vst [vmem:[%s1575_s30 + $0x8] sm:$0xff] %v1154_v34   ;;  %v1149_v38 = vpack.c.bf16 %v847_v49, %v846_v32  ;;  %v1224_v39 = vpop.f32.mrf.mxu1 }
 0x199   : > { %v827_v41 = vadd.f32 %v1224_v39, %v1565_v10  ;;  %v854_v46 = vmax.f32 %v816_v40, 0.0 }
 0x19a   : > { %1150 = vst [vmem:[%s1575_s30] sm:$0xff] %v1149_v38   ;;  %v818_v42 = vpop.f32.mrf.mxu1 }
 0x19b   : > { %v857_v44 = vmax.f32 %v827_v41, 0.0  ;;  %v819_v45 = vadd.f32 %v1565_v10, %v818_v42 }
 0x19d   : > { %v1174_v47 = vpack.c.bf16 %v857_v44, %v856_v43  ;;  %v855_v48 = vmax.f32 %v819_v45, 0.0 }
 0x19f   : > { %1190 = vst [vmem:[%s1575_s30 + $0x28] sm:$0xff] %v1174_v47   ;;  %v1169_v52 = vpack.c.bf16 %v855_v48, %v854_v46 }
 0x1a1   : > { %1189 = vst [vmem:[%s1575_s30 + $0x20] sm:$0xff] %v1169_v52  }
 0x1b7   : > { %v1219_v53 = vpop.f32.mrf.mxu0 }
 0x1b8   : > { %v808_v55 = vadd.f32 %v1219_v53, %v1565_v10 }
 0x1b9   : > { %v799_v57 = vpop.f32.mrf.mxu0 }
 0x1ba   : > { %v852_v58 = vmax.f32 %v808_v55, 0.0  ;;  %v800_v59 = vadd.f32 %v1565_v10, %v799_v57 }
 0x1bb   : > { %v1220_v60 = vpop.f32.mrf.mxu0 }
 0x1bc   : > { %v945_v61 = vmax.f32 %v848_v28, %v852_v58  ;;  %v850_v62 = vmax.f32 %v800_v59, 0.0  ;;  %v811_v0 = vadd.f32 %v1220_v60, %v1565_v10 }
 0x1bd   : > { %v802_v1 = vpop.f32.mrf.mxu0 }
 0x1be   : > { %v943_v2 = vmax.f32 %v846_v32, %v850_v62  ;;  %v853_v3 = vmax.f32 %v811_v0, 0.0  ;;  %v803_v4 = vadd.f32 %v1565_v10, %v802_v1  ;;  %v949_v5 = vmax.f32 %v945_v61, %v856_v43 }
 0x1c0   : > { %v1164_v35 = vpack.c.bf16 %v853_v3, %v852_v58  ;;  %v946_v6 = vmax.f32 %v849_v29, %v853_v3  ;;  %v851_v7 = vmax.f32 %v803_v4, 0.0  ;;  %v947_v8 = vmax.f32 %v943_v2, %v854_v46 }
 0x1c2   : > { %1188 = vst [vmem:[%s1575_s30 + $0x18] sm:$0xff] %v1164_v35   ;;  %v1159_v9 = vpack.c.bf16 %v851_v7, %v850_v62  ;;  %v944_v11 = vmax.f32 %v847_v49, %v851_v7  ;;  %v950_v12 = vmax.f32 %v946_v6, %v857_v44 }
 0x1c4   : > { %1187 = vst [vmem:[%s1575_s30 + $0x10] sm:$0xff] %v1159_v9   ;;  %v948_v13 = vmax.f32 %v944_v11, %v855_v48 }
 0x1d8   : > { %v1227_v56 = vpop.f32.mrf.mxu1 }
 0x1d9   : > { %v840_v14 = vadd.f32 %v1227_v56, %v1565_v10 }
 0x1da   : > { %v831_v15 = vpop.f32.mrf.mxu1 }
 0x1db   : > { %v832_v16 = vadd.f32 %v1565_v10, %v831_v15  ;;  %v860_v51 = vmax.f32 %v840_v14, 0.0 }
 0x1dc   : > { %v1228_v17 = vpop.f32.mrf.mxu1 }
 0x1dd   : > { %v843_v18 = vadd.f32 %v1228_v17, %v1565_v10  ;;  %v858_v50 = vmax.f32 %v832_v16, 0.0  ;;  %v953_v21 = vmax.f32 %v949_v5, %v860_v51 }
 0x1de   : > { %v834_v19 = vpop.f32.mrf.mxu1 }
 0x1df   : > { %v861_v63 = vmax.f32 %v843_v18, 0.0  ;;  %v835_v20 = vadd.f32 %v1565_v10, %v834_v19  ;;  %v951_v31 = vmax.f32 %v947_v8, %v858_v50  ;;  %v942_v10 = vld [vmem:[%s1559_s20] sm:$0x1] }
 0x1e1   : > { %v1184_v54 = vpack.c.bf16 %v861_v63, %v860_v51  ;;  %v954_v22 = vmax.f32 %v950_v12, %v861_v63  ;;  %v859_v23 = vmax.f32 %v835_v20, 0.0 }
 0x1e3   : > { %1192 = vst [vmem:[%s1575_s30 + $0x38] sm:$0xff] %v1184_v54   ;;  %v956_v24 = vmax.f32 %v953_v21, %v954_v22  ;;  %v1179_v25 = vpack.c.bf16 %v859_v23, %v858_v50  ;;  %v952_v26 = vmax.f32 %v948_v13, %v859_v23 }
 0x1e5   : > { %1191 = vst [vmem:[%s1575_s30 + $0x30] sm:$0xff] %v1179_v25   ;;  %v955_v27 = vmax.f32 %v951_v31, %v952_v26 }
 0x1e7   : > { %v957_v28 = vmax.f32 %v955_v27, %v956_v24 }
 0x1e9   : > { %v958_v29 = vrot.slane %v957_v28, 4 }
 0x1eb   : > { %v959_v30 = vmax.f32 %v957_v28, %v958_v29 }
 0x1ed   : > { %v960_v33 = vrot.slane %v959_v30, 2 }
 0x1ef   : > { %v961_v32 = vmax.f32 %v959_v30, %v960_v33 }
 0x1f1   : > { %v962_v34 = vrot.slane %v961_v32, 1 }
 0x1f3   : > { %v963_v49 = vmax.f32 %v961_v32, %v962_v34 }
 0x1f5   : > { %v964_v36 = vmax.f32 %v942_v10, %v963_v49 }
 0x1f7   : > { %965 = vst [vmem:[%s1559_s20] sm:$0x1] %v964_v36 }
 0x1f8 PF: > { %s17_s23 = sadd.s32 1, %s1313_s23   ;;  %s1615_s21 = smov %s1309_s22 }
 0x1f9   : > { %p14_p5 = scmp.ge.s32.totalorder %s17_s23, 4   ;;  %s1616_s22 = smov %s1618_s24 }
 0x1fb   :  { %16 = sbr.rel (!%p14_p5) target bundleno = 2 (0x2), region = 89 }

// kernel: spd_bbox_normal_net.7
= control target key start
LH: loop header
LB: loop body
LE: loop exit
PB: predicated region body
PF: predicated region fallthrough
CT: control target
= control target key end

     0   :  { %s675_s18 = smov 0   ;;  %s755_s0 = inlined_call_operand.vmem [shape: f32[2,8,128], index: 0, kind: input, shape index: {}]   ;;  %s756_s1 = inlined_call_operand.vmem [shape: f32[2,8,128], index: 1, kind: input, shape index: {}]   ;;  %s757_s2 = inlined_call_operand.vmem [shape: bf16[128,128], index: 2, kind: input, shape index: {}]   ;;  %s758_s3 = inlined_call_operand.vmem [shape: bf16[128,128], index: 3, kind: input, shape index: {}]   ;;  %s759_s4 = inlined_call_operand.vmem [shape: f32[1,128], index: 4, kind: input, shape index: {}]   ;;  %s760_s5 = inlined_call_operand.vmem [shape: f32[2,8,128], index: 5, kind: output, shape index: {}]  }
   0x1 LB: > { %s524_s19 = sadd.s32 4294967295, %s641_s18   ;;  %p528_p0 = scmp.ge.s32.totalorder %s641_s18, 1  ;;  %s641_s18 = sphi %s675_s18, %s15_s18  }
   0x2   : > { %p195_p1 = scmp.lt.s32.totalorder %s641_s18, 3 }
   0x4   : > { %p196_p2 = pnand %p528_p0, %p195_p1 }
   0x5   : > { %p225_p3 = scmp.lt.s32.totalorder (!%p196_p2), %s524_s19, 1 }
   0x6   : > { %199 = sbr.rel (%p196_p2) target bundleno = 442 (0x1ba), region = 40 }
   0xb   : > { %v619_v0 = vld [vmem:[%s757_s2 + $0x38] sm:$0xff]   ;;  %v643_v1 = vmov 0.0   ;;  %v620_v2 = vld [vmem:[%s757_s2 + $0x30] sm:$0xff]   ;;  %vm644_vm0 = vmmov 0   ;;  %v621_v3 = vld [vmem:[%s757_s2 + $0x28] sm:$0xff]   ;;  %s762_s19 = smov (!%p225_p3, %s524_s19), 1 }
   0xc   : > { %569 = vmatprep.subr.bf16.mxu0 %v643_v1  ;;  %589 = vmatprep.subr.bf16.mxu1 %v643_v1  ;;  %v627_v4 = vld [vmem:[%s758_s3 + $0x38] sm:$0xff]   ;;  %v622_v5 = vld [vmem:[%s757_s2 + $0x20] sm:$0xff]   ;;  %v628_v6 = vld [vmem:[%s758_s3 + $0x30] sm:$0xff]   ;;  %s717_s15 = sshll.u32 %s762_s19, 3 }
   0xd   : > { %570 = vmatpush3.bf16.msra.mxu0 %v619_v0  ;;  %585 = vmatprep.mubr.msk.bf16.mxu0 %vm644_vm0, %v643_v1  ;;  %v623_v7 = vld [vmem:[%s757_s2 + $0x18] sm:$0xff]   ;;  %v629_v8 = vld [vmem:[%s758_s3 + $0x28] sm:$0xff]   ;;  %v624_v9 = vld [vmem:[%s757_s2 + $0x10] sm:$0xff]   ;;  %s228_s22 = scalar_lea.vmem %s755_s0, %s717_s15  ;;  %s232_s9 = scalar_lea.vmem %s756_s1, %s717_s15 }
   0xe   : > { %571 = vmatprep.subr.bf16.mxu0 %v643_v1  ;;  %605 = vmatprep.mubr.msk.bf16.mxu1 %vm644_vm0, %v643_v1  ;;  %v630_v10 = vld [vmem:[%s758_s3 + $0x20] sm:$0xff]   ;;  %v625_v11 = vld [vmem:[%s757_s2 + $0x8] sm:$0xff]   ;;  %v631_v12 = vld [vmem:[%s758_s3 + $0x18] sm:$0xff]   ;;  %s236_s14 = scalar_lea.vmem %s760_s5, %s717_s15 }
   0xf   : > { %590 = vmatpush3.bf16.msra.mxu1 %v627_v4  ;;  %v626_v13 = vld [vmem:[%s757_s2] sm:$0xff]   ;;  %v632_v15 = vld [vmem:[%s758_s3 + $0x10] sm:$0xff]   ;;  %v633_v17 = vld [vmem:[%s758_s3 + $0x8] sm:$0xff]  }
  0x10   : > { %591 = vmatprep.subr.bf16.mxu1 %v643_v1  ;;  %v238_v14 = vld [vmem:[%s228_s22] sm:$0xff] }
  0x11   : > { %572 = vmatpush3.bf16.msra.mxu0 %v620_v2  ;;  %v239_v16 = vpack.c.bf16 %v238_v14, %v238_v14  ;;  %v634_v18 = vld [vmem:[%s758_s3] sm:$0xff]  }
  0x12   : > { %573 = vmatprep.subr.bf16.mxu0 %v643_v1  ;;  %v256_v19 = vld [vmem:[%s232_s9] sm:$0xff] }
  0x13   : > { %592 = vmatpush3.bf16.msra.mxu1 %v628_v6  ;;  %v540_v27 = vld [vmem:[%s759_s4] ss:$0 sm:$0xff] }
  0x14   : > { %593 = vmatprep.subr.bf16.mxu1 %v643_v1 }
  0x15   : > { %574 = vmatpush3.bf16.msra.mxu0 %v621_v3 }
  0x16   : > { %575 = vmatprep.subr.bf16.mxu0 %v643_v1 }
  0x17   : > { %594 = vmatpush3.bf16.msra.mxu1 %v629_v8 }
  0x18   : > { %595 = vmatprep.subr.bf16.mxu1 %v643_v1 }
  0x19   : > { %576 = vmatpush3.bf16.msra.mxu0 %v622_v5 }
  0x1a   : > { %577 = vmatprep.subr.bf16.mxu0 %v643_v1 }
  0x1b   : > { %596 = vmatpush3.bf16.msra.mxu1 %v630_v10 }
  0x1c   : > { %597 = vmatprep.subr.bf16.mxu1 %v643_v1 }
  0x1d   : > { %578 = vmatpush3.bf16.msra.mxu0 %v623_v7 }
  0x1e   : > { %579 = vmatprep.subr.bf16.mxu0 %v643_v1 }
  0x1f   : > { %598 = vmatpush3.bf16.msra.mxu1 %v631_v12 }
  0x20   : > { %599 = vmatprep.subr.bf16.mxu1 %v643_v1 }
  0x21   : > { %580 = vmatpush3.bf16.msra.mxu0 %v624_v9 }
  0x22   : > { %581 = vmatprep.subr.bf16.mxu0 %v643_v1 }
  0x23   : > { %600 = vmatpush3.bf16.msra.mxu1 %v632_v15 }
  0x24   : > { %601 = vmatprep.subr.bf16.mxu1 %v643_v1 }
  0x25   : > { %582 = vmatpush3.bf16.msra.mxu0 %v625_v11 }
  0x26   : > { %583 = vmatprep.subr.bf16.mxu0 %v643_v1 }
  0x27   : > { %602 = vmatpush3.bf16.msra.mxu1 %v633_v17 }
  0x28   : > { %603 = vmatprep.subr.bf16.mxu1 %v643_v1 }
  0x29   : > { %584 = vmatpush3.bf16.msra.mxu0 %v626_v13 }
  0x2b   : > { %604 = vmatpush3.bf16.msra.mxu1 %v634_v18 }
  0x2c   : > { %586 = vmatmul.mubr.bf16.vlgmr.msra.gmra.mxu0 %v239_v16 }
  0xec   : > { %v339_v20 = vpop.f32.mrf.mxu0 }
  0xed   : > { %v340_v21 = vadd.f32 %v339_v20, %v256_v19 }
  0xee   : > { %v587_v22 = vpop.f32.mrf.mxu0 }
  0xef   : > { %v345_v23 = vmax.f32 %v340_v21, 0.0 }
  0xf0   : > { %v342_v24 = vpop.f32.mrf.mxu0 }
  0xf1   : > { %v346_v25 = vpack.c.bf16 %v345_v23, %v345_v23 }
  0xf2   : > { %v588_v26 = vpop.f32.mrf.mxu0 }
  0xf3   : > { %606 = vmatmul.mubr.bf16.vlgmr.msra.gmra.mxu1 %v346_v25 }
 0x1b3   : > { %v452_v28 = vpop.f32.mrf.mxu1 }
 0x1b4   : > { %v453_v29 = vadd.f32 %v540_v27, %v452_v28 }
 0x1b5   : > { %v607_v30 = vpop.f32.mrf.mxu1 }
 0x1b6   : > { %458 = vst [vmem:[%s236_s14] sm:$0xff] %v453_v29 }
 0x1b7   : > { %v455_v31 = vpop.f32.mrf.mxu1 }
 0x1b9   : > { %v608_v32 = vpop.f32.mrf.mxu1 }
 0x1ba PF: > { %s15_s18 = sadd.s32 1, %s641_s18  }
 0x1bb   : > { %p12_p4 = scmp.ge.s32.totalorder %s15_s18, 4  }
 0x1bd   :  { %14 = sbr.rel (!%p12_p4) target bundleno = 1 (0x1), region = 73 }

</bundles_post_ra>
